<compile_context>
chip_gen: v6e
topology: v6e:2x2x1
jax: 0.10.0
libtpu: 0.0.40
codegen_flags: <defaults>
</compile_context>

<pallas_src>
import math
import functools

import jax
import jax.numpy as jnp
from jax.experimental import pallas as pl
from jax.experimental.pallas import tpu as pltpu

# ----------------------------- configuration (small synthetic shapes) -------------------
B = 2                      # batch
N_CAMS = 2                 # number of camera views
IN_CHANNELS = 8            # cfg.IN_CHANNELS
EMBED_DIMS = 32            # cfg.EMBED_DIMS  (== PT_FEAT_DIM, asserted in forward)
PT_FEAT_DIM = 32           # cfg.POINTS_FEAT_DIM
DEPTH_NUM = 4              # cfg.DEPTH_NUM
INIT_PT_FEAT_DIM = EMBED_DIMS // DEPTH_NUM   # 8  (cfg.INIT_POINTS_FEAT_DIM)
POSITION_DIM = 3 * DEPTH_NUM                 # 12
NUM_QUERY = 16             # cfg.NUM_QUERY (number of mesh vertices)
NUM_PREDS = 2              # cfg.NUM_PREDS
NSAMPLE = 64               # cfg.N_SAMPLE
RADIUS = 0.6               # cfg.RADIUS_SAMPLE
H = W = 8                  # feature-map spatial size
INP_H = INP_W = 64         # img_metas['inp_img_shape']
POSITION_RANGE = (-1.0, -1.0, 0.0, 1.0, 1.0, 1.5)   # cfg.POSITION_RANGE
LID = True
DEPTH_START, DEPTH_END = 0.1, 1.0
NUM_FEATS = EMBED_DIMS // 2      # SinePositionalEncoding3D num_feats -> 3*NUM_FEATS = 48
CENTER_SHIFT = True


# ----------------------------- small math helpers (traceable in & out of kernels) -------
def _inverse_sigmoid(x, eps=1e-5):
    x = jnp.clip(x, 0.0, 1.0)
    x1 = jnp.clip(x, eps, None)
    x2 = jnp.clip(1.0 - x, eps, None)
    return jnp.log(x1 / x2)


def _sigmoid(x):
    return 1.0 / (1.0 + jnp.exp(-x))


def _interleave_sin_cos(p):
    s = jnp.sin(p[..., 0::2])
    c = jnp.cos(p[..., 1::2])
    return jnp.stack((s, c), axis=-1).reshape(p.shape[:-1] + (-1,))


def pos2posemb3d(pos, num_pos_feats=128, temperature=10000.0):
    scale = 2.0 * math.pi
    pos = pos * scale
    dim_t = jnp.arange(num_pos_feats, dtype=jnp.float32)
    dim_t = temperature ** (2.0 * jnp.floor(dim_t / 2.0) / num_pos_feats)
    pos_x = pos[..., 0, None] / dim_t
    pos_y = pos[..., 1, None] / dim_t
    pos_z = pos[..., 2, None] / dim_t
    return jnp.concatenate(
        (_interleave_sin_cos(pos_y), _interleave_sin_cos(pos_x), _interleave_sin_cos(pos_z)),
        axis=-1)


# ----------------------------- Pallas kernel 1: fused per-pixel projection --------------
def _fused_pixel_kernel(feat_ref, coords_ref, sin_ref,
                        ipw_ref, ipb_ref, pew1_ref, peb1_ref, pew2_ref, peb2_ref,
                        adw_ref, adb_ref, o_ref):
    # input_proj
    x = jnp.dot(feat_ref[...], ipw_ref[...], preferred_element_type=jnp.float32) + ipb_ref[...]
    # position_encoder: inverse_sigmoid -> conv1x1 + ReLU -> conv1x1
    c = _inverse_sigmoid(coords_ref[...])
    h = jnp.maximum(
        jnp.dot(c, pew1_ref[...], preferred_element_type=jnp.float32) + peb1_ref[...], 0.0)
    pe = jnp.dot(h, pew2_ref[...], preferred_element_type=jnp.float32) + peb2_ref[...]
    # adapt_pos3d on the sine positional encoding
    sn = jnp.dot(sin_ref[...], adw_ref[...], preferred_element_type=jnp.float32) + adb_ref[...]
    # x = x + posi_embed  (posi_embed = sin_embed + coords_embed)
    o_ref[...] = x + pe + sn


def fused_pixel_projection(feat_rows, coords_rows, sin_rows, params, tile_rows=128):
    R = feat_rows.shape[0]
    if R % tile_rows != 0:
        tile_rows = R
    grid = (R // tile_rows,)

    def row_spec(c):
        return pl.BlockSpec((tile_rows, c), lambda i: (i, 0))

    def full_spec(arr):
        nd = arr.ndim
        return pl.BlockSpec(arr.shape, lambda i, nd=nd: (0,) * nd)

    return pl.pallas_call(
        _fused_pixel_kernel,
        out_shape=jax.ShapeDtypeStruct((R, EMBED_DIMS), jnp.float32),
        grid=grid,
        in_specs=[
            row_spec(IN_CHANNELS),
            row_spec(POSITION_DIM),
            row_spec(3 * NUM_FEATS),
            full_spec(params['input_proj_w']), full_spec(params['input_proj_b']),
            full_spec(params['pe_w1']), full_spec(params['pe_b1']),
            full_spec(params['pe_w2']), full_spec(params['pe_b2']),
            full_spec(params['adapt_w']), full_spec(params['adapt_b']),
        ],
        out_specs=row_spec(EMBED_DIMS),
        compiler_params=pltpu.CompilerParams(dimension_semantics=("parallel",)),
    )(feat_rows, coords_rows, sin_rows,
      params['input_proj_w'], params['input_proj_b'],
      params['pe_w1'], params['pe_b1'], params['pe_w2'], params['pe_b2'],
      params['adapt_w'], params['adapt_b'])


# ----------------------------- Pallas kernel 2: fused center-shift MLP ------------------
def _center_shift_kernel(x_ref, w1_ref, b1_ref, w2_ref, b2_ref, o_ref):
    h = jnp.maximum(
        jnp.dot(x_ref[...], w1_ref[...], preferred_element_type=jnp.float32) + b1_ref[...], 0.0)
    o_ref[...] = jnp.dot(h, w2_ref[...], preferred_element_type=jnp.float32) + b2_ref[...]


def center_shift_mlp(rp_t, params):
    M = rp_t.shape[0]
    full = lambda a: pl.BlockSpec(a.shape, lambda i, nd=a.ndim: (0,) * nd)
    return pl.pallas_call(
        _center_shift_kernel,
        out_shape=jax.ShapeDtypeStruct((M, 1), jnp.float32),
        grid=(1,),
        in_specs=[pl.BlockSpec((M, NUM_QUERY), lambda i: (0, 0)),
                  full(params['cs_w1']), full(params['cs_b1']),
                  full(params['cs_w2']), full(params['cs_b2'])],
        out_specs=pl.BlockSpec((M, 1), lambda i: (0, 0)),
    )(rp_t, params['cs_w1'], params['cs_b1'], params['cs_w2'], params['cs_b2'])


# ----------------------------- Pallas kernel 3: fused refinement decoder ----------------
def _decoder_kernel(qe_ref, xns_ref, pxT_ref, rp_ref,
                    qew1_ref, qeb1_ref, qew2_ref, qeb2_ref,
                    tuw_ref, tub_ref,
                    rw1_ref, rb1_ref, rw2_ref, rb2_ref,
                    o_ref, *, scale, pr):
    # query_embedding MLP (fused; hidden never leaves VMEM)
    qe_in = qe_ref[0]                                                          # (Q, 54)
    qh = jnp.maximum(
        jnp.dot(qe_in, qew1_ref[...], preferred_element_type=jnp.float32) + qeb1_ref[...], 0.0)
    q_feat = jnp.dot(qh, qew2_ref[...], preferred_element_type=jnp.float32) + qeb2_ref[...]

    # transition_up on the sampled point features (fused)
    pt_feats = (jnp.dot(xns_ref[0], tuw_ref[...], preferred_element_type=jnp.float32)
                + tub_ref[...])                                                # (P, Dp)
    kT = pt_feats.T                                                            # hoisted

    # geometric bias: |q - p|^2 via VPU broadcasts (no K=3 MXU push, no in-kernel px xpose)
    qx = rp_ref[0]                                                             # (Q, 3)
    pxT = pxT_ref[0]                                                           # (3, P)
    d2 = ((qx[:, 0:1] - pxT[0:1, :]) ** 2
          + (qx[:, 1:2] - pxT[1:2, :]) ** 2
          + (qx[:, 2:3] - pxT[2:3, :]) ** 2)                                   # (Q, P), hoisted

    rw1 = rw1_ref[...]
    rb1 = rb1_ref[...]
    rw2 = rw2_ref[...]
    rb2 = rb2_ref[...]

    # TODO(synk): the real `build_transformer(cfg.TRANSFORMER)` point transformer is external
    # to the provided source; a representative geometry-biased cross-attention decoder with
    # DETR-style iterative refinement through `reg_branches` is implemented instead.
    ref = qx
    preds = []
    for i in range(NUM_PREDS):                                                 # static unroll
        s = jnp.dot(q_feat, kT, preferred_element_type=jnp.float32) * scale - d2
        s = s - jnp.max(s, axis=-1, keepdims=True)
        p = jnp.exp(s)
        p = p * pl.reciprocal(jnp.sum(p, axis=-1, keepdims=True), approx=True)
        q_feat = q_feat + jnp.dot(p, pt_feats, preferred_element_type=jnp.float32)
        hh = jnp.maximum(
            jnp.dot(q_feat, rw1[i], preferred_element_type=jnp.float32) + rb1[i], 0.0)
        delta = jnp.dot(hh, rw2[i], preferred_element_type=jnp.float32) + rb2[i]
        ref = _sigmoid(_inverse_sigmoid(ref) + delta)
        preds.append(ref[None, None])                                          # (1,1,Q,3)

    out = jnp.concatenate(preds, axis=0)                                       # (P_iters,1,Q,3)
    # nan_to_num (manual: nan -> 0, +/-inf -> +/-finfo.max) then un-normalize to world range
    big = jnp.finfo(jnp.float32).max
    out = jnp.where(jnp.isnan(out), 0.0, out)
    out = jnp.clip(out, -big, big)
    out = jnp.concatenate(
        [out[..., 0:1] * (pr[3] - pr[0]) + pr[0],
         out[..., 1:2] * (pr[4] - pr[1]) + pr[1],
         out[..., 2:3] * (pr[5] - pr[2]) + pr[2]], axis=-1)
    o_ref[...] = out                                                           # single store


def pallas_decoder(qe_in, x3d_ns, pt_xyzT, rp_n, params):
    Bq = qe_in.shape[0]
    full = lambda a: pl.BlockSpec(a.shape, lambda b, nd=a.ndim: (0,) * nd)
    batch3 = lambda s1, s2: pl.BlockSpec((1, s1, s2), lambda b: (b, 0, 0))
    return pl.pallas_call(
        functools.partial(_decoder_kernel, scale=1.0 / math.sqrt(PT_FEAT_DIM),
                          pr=POSITION_RANGE),
        out_shape=jax.ShapeDtypeStruct((NUM_PREDS, Bq, NUM_QUERY, 3), jnp.float32),
        grid=(Bq,),
        in_specs=[batch3(NUM_QUERY, qe_in.shape[-1]),
                  batch3(NSAMPLE, INIT_PT_FEAT_DIM),
                  batch3(3, NSAMPLE),
                  batch3(NUM_QUERY, 3),
                  full(params['qe_w1']), full(params['qe_b1']),
                  full(params['qe_w2']), full(params['qe_b2']),
                  full(params['tu_w']), full(params['tu_b']),
                  full(params['reg_w1']), full(params['reg_b1']),
                  full(params['reg_w2']), full(params['reg_b2'])],
        out_specs=pl.BlockSpec((NUM_PREDS, 1, NUM_QUERY, 3), lambda b: (0, b, 0, 0)),
        compiler_params=pltpu.CompilerParams(dimension_semantics=("parallel",)),
    )(qe_in, x3d_ns, pt_xyzT, rp_n,
      params['qe_w1'], params['qe_b1'], params['qe_w2'], params['qe_b2'],
      params['tu_w'], params['tu_b'],
      params['reg_w1'], params['reg_b1'], params['reg_w2'], params['reg_b2'])


# ----------------------------- XLA glue: geometry, sine PE, ball query ------------------
def frustum_geometry(cam_intr, cam_extr):
    """PETR frustum lifting.  Returns:
       coords_rows: [BN*H*W, 3*D] normalized coords (channel order c = d*3 + xyz),
       coords3d_abs: [BN, W, H, D, 3] absolute 3-D points."""
    BN = cam_intr.shape[0]
    coords_h = jnp.arange(H, dtype=jnp.float32) * INP_H / H
    coords_w = jnp.arange(W, dtype=jnp.float32) * INP_W / W
    index = jnp.arange(DEPTH_NUM, dtype=jnp.float32)
    if LID:
        bin_size = (DEPTH_END - DEPTH_START) / (DEPTH_NUM * (1 + DEPTH_NUM))
        coords_d = DEPTH_START + bin_size * index * (index + 1.0)
    else:
        bin_size = (DEPTH_END - DEPTH_START) / DEPTH_NUM
        coords_d = DEPTH_START + bin_size * index
    cw, ch, cd = jnp.meshgrid(coords_w, coords_h, coords_d, indexing='ij')      # [W,H,D]
    coords = jnp.stack([cw, ch, cd], axis=-1)                                   # [W,H,D,3]

    fx = cam_intr[:, 0, 0][:, None]
    fy = cam_intr[:, 1, 1][:, None]
    cx = cam_intr[:, 0, 2][:, None]
    cy = cam_intr[:, 1, 2][:, None]
    cam_param = jnp.concatenate([fx, fy, cx, cy], axis=-1).reshape(BN, 1, 1, 1, 4)

    coords_uv = (coords[None, ..., :2] - cam_param[..., 2:4]) / cam_param[..., :2]
    coords_dd = jnp.broadcast_to(coords[None, ..., 2:3], (BN, W, H, DEPTH_NUM, 1))
    coords_xy = coords_uv * coords_dd
    cam_pts = jnp.concatenate([coords_xy, coords_dd], axis=-1)                  # [BN,W,H,D,3]
    homo = jnp.concatenate([cam_pts, jnp.ones_like(cam_pts[..., :1])], axis=-1)
    coords3d = jnp.einsum('bij,bwhdj->bwhdi', cam_extr, homo)[..., :3]
    coords3d_abs = coords3d

    pr = POSITION_RANGE
    coords3d_n = jnp.stack(
        [(coords3d[..., 0] - pr[0]) / (pr[3] - pr[0]),
         (coords3d[..., 1] - pr[1]) / (pr[4] - pr[1]),
         (coords3d[..., 2] - pr[2]) / (pr[5] - pr[2])], axis=-1)                # [BN,W,H,D,3]

    coords_rows = jnp.transpose(coords3d_n, (0, 2, 1, 3, 4))                    # [BN,H,W,D,3]
    coords_rows = coords_rows.reshape(BN * H * W, DEPTH_NUM * 3)                # c = d*3 + xyz
    return coords_rows, coords3d_abs


def sine_positional_encoding_3d_rows(Bsz, Nc, Hh, Ww, num_feats, temperature=10000.0,
                                     normalize=True, scale=2.0 * math.pi, eps=1e-6,
                                     offset=0.0):
    """PETR-style SinePositionalEncoding3D, channel-LAST.  The head always builds an
    all-zeros mask (and F.interpolate of zeros stays zeros)."""
    mask = jnp.zeros((Bsz, Nc, Hh, Ww), jnp.float32)
    not_mask = 1.0 - mask
    n_embed = jnp.cumsum(not_mask, axis=1)
    y_embed = jnp.cumsum(not_mask, axis=2)
    x_embed = jnp.cumsum(not_mask, axis=3)
    if normalize:
        n_embed = (n_embed + offset) / (n_embed[:, -1:, :, :] + eps) * scale
        y_embed = (y_embed + offset) / (y_embed[:, :, -1:, :] + eps) * scale
        x_embed = (x_embed + offset) / (x_embed[:, :, :, -1:] + eps) * scale
    dim_t = jnp.arange(num_feats, dtype=jnp.float32)
    dim_t = temperature ** (2.0 * jnp.floor(dim_t / 2.0) / num_feats)
    pos_n = _interleave_sin_cos(n_embed[..., None] / dim_t)
    pos_y = _interleave_sin_cos(y_embed[..., None] / dim_t)
    pos_x = _interleave_sin_cos(x_embed[..., None] / dim_t)
    return jnp.concatenate((pos_n, pos_y, pos_x), axis=-1)                      # [B,N,H,W,3nf]


def ball_query_indices(pt_xyz, center_point, k, radius):
    """PointNet++ ball-query: indices of the first k in-order points within `radius` of the
    center; if fewer than k, the first found index is repeated."""
    Npt = pt_xyz.shape[1]
    d2 = jnp.sum((pt_xyz - center_point) ** 2, axis=-1)                         # [B, Npt]
    within = d2 <= radius * radius
    idx = jnp.arange(Npt, dtype=jnp.int32)[None, :]
    masked = jnp.where(within, idx, Npt)                                        # sentinel = Npt
    neg_topk, _ = jax.lax.top_k(-masked, k)                                     # k smallest
    order = -neg_topk                                                           # ascending
    first = order[:, :1]
    sel = jnp.where(order >= Npt, first, order)
    sel = jnp.where(sel >= Npt, 0, sel)                                         # empty ball
    return sel


# ----------------------------- forward --------------------------------------------------
def poem_forward(params, mlvl_feat, cam_intr, cam_extr, reference_points, template_mesh, perm):
    pr = POSITION_RANGE
    Bsz, Nc, Cin, Hh, Ww = mlvl_feat.shape
    BN = Bsz * Nc

    # go channel-last ONCE at the PyTorch boundary; everything downstream stays channel-last
    feat_rows = jnp.transpose(mlvl_feat, (0, 1, 3, 4, 2)).reshape(BN * Hh * Ww, Cin)

    # frustum geometry + sine positional encoding (small XLA glue)
    coords_rows, coords3d_abs = frustum_geometry(cam_intr, cam_extr)
    sin_rows = sine_positional_encoding_3d_rows(Bsz, Nc, Hh, Ww, NUM_FEATS)
    sin_rows = sin_rows.reshape(BN * Hh * Ww, 3 * NUM_FEATS)

    # fused Pallas kernel: input_proj + position_encoder + adapt_pos3d + `x + posi_embed`
    x_rows = fused_pixel_projection(feat_rows, coords_rows, sin_rows, params)   # [BN*H*W, E]

    # center point (absolute coords) + fused center-shift MLP
    center_point = jnp.mean(reference_points, axis=1, keepdims=True)            # [B,1,3]
    if CENTER_SHIFT:
        rp_t = jnp.transpose(reference_points, (0, 2, 1)).reshape(Bsz * 3, NUM_QUERY)
        shift = center_shift_mlp(rp_t, params).reshape(Bsz, 3, 1)
        center_point = center_point + 0.01 * jnp.transpose(shift, (0, 2, 1))

    # lift features to a point cloud: channel c splits as (feat, depth); points ordered (n,w,h,d)
    x3d = x_rows.reshape(Bsz, Nc, Hh, Ww, INIT_PT_FEAT_DIM, DEPTH_NUM)
    x3d = jnp.transpose(x3d, (0, 1, 3, 2, 5, 4)).reshape(Bsz, -1, INIT_PT_FEAT_DIM)
    coords3d_abs = coords3d_abs.reshape(Bsz, -1, 3)

    # query embedding inputs (the MLP itself runs inside the fused decoder kernel)
    ref_embed = pos2posemb3d(params['reference_embed'], num_pos_feats=NUM_FEATS)  # [Q, 3*nf]
    ref_embed = jnp.broadcast_to(ref_embed[None], (Bsz, NUM_QUERY, 3 * NUM_FEATS))
    template = jnp.broadcast_to(template_mesh[None], (Bsz, NUM_QUERY, 3))
    rp_n = jnp.stack([(reference_points[..., 0] - pr[0]) / (pr[3] - pr[0]),
                      (reference_points[..., 1] - pr[1]) / (pr[4] - pr[1]),
                      (reference_points[..., 2] - pr[2]) / (pr[5] - pr[2])], axis=-1)
    qe_in = jnp.concatenate([ref_embed, rp_n, template], axis=-1)                 # [B,Q,54]

    # random permutation + ball query: permute only the xyz cloud, map indices back through
    # `perm`, and gather the features once at (B, NSAMPLE, C') instead of (B, N*H*W*D, C').
    coords_perm = coords3d_abs[:, perm, :]
    sel = ball_query_indices(coords_perm, center_point, NSAMPLE, RADIUS)          # [B,k]
    pt_xyz = jnp.take_along_axis(coords_perm, sel[..., None], axis=1)             # [B,k,3]
    orig_idx = perm[sel]                                                          # [B,k]
    x3d_ns = jnp.take_along_axis(x3d, orig_idx[..., None], axis=1)                # [B,k,C']
    # TODO(synk): move the ball-query index selection + feature gather into a Pallas kernel
    # using PrefetchScalarGridSpec so the selected indices drive the DMA directly.

    pt_xyz_n = jnp.stack([(pt_xyz[..., 0] - pr[0]) / (pr[3] - pr[0]),
                          (pt_xyz[..., 1] - pr[1]) / (pr[4] - pr[1]),
                          (pt_xyz[..., 2] - pr[2]) / (pr[5] - pr[2])], axis=-1)
    pt_xyzT = jnp.transpose(pt_xyz_n, (0, 2, 1))                                  # [B,3,k]

    # ONE fused decoder kernel (query MLP + transition_up + NUM_PREDS refinement iterations
    # + nan_to_num + range un-normalization); output is already [num_preds, B, Q, 3].
    all_coords_preds = pallas_decoder(qe_in, x3d_ns, pt_xyzT, rp_n, params)
    return {'all_coords_preds': all_coords_preds}


# ----------------------------- deterministic parameter init -----------------------------
def _init_linear(key, fan_in, fan_out):
    k1, k2 = jax.random.split(key)
    bound = 1.0 / math.sqrt(fan_in)
    w = jax.random.uniform(k1, (fan_in, fan_out), jnp.float32, -bound, bound)
    b = jax.random.uniform(k2, (1, fan_out), jnp.float32, -bound, bound)
    return w, b


def build_params(key):
    keys = jax.random.split(key, 12)
    p = {}
    p['input_proj_w'], p['input_proj_b'] = _init_linear(keys[0], IN_CHANNELS, EMBED_DIMS)
    p['adapt_w'], p['adapt_b'] = _init_linear(keys[1], EMBED_DIMS * 3 // 2, EMBED_DIMS)
    p['pe_w1'], p['pe_b1'] = _init_linear(keys[2], POSITION_DIM, EMBED_DIMS * 2)
    p['pe_w2'], p['pe_b2'] = _init_linear(keys[3], EMBED_DIMS * 2, EMBED_DIMS)
    p['reference_embed'] = jax.random.uniform(keys[4], (NUM_QUERY, EMBED_DIMS),
                                              jnp.float32, 0.0, 1.0)
    p['qe_w1'], p['qe_b1'] = _init_linear(keys[5], 6 + EMBED_DIMS * 3 // 2, EMBED_DIMS)
    p['qe_w2'], p['qe_b2'] = _init_linear(keys[6], EMBED_DIMS, PT_FEAT_DIM)
    p['tu_w'], p['tu_b'] = _init_linear(keys[7], INIT_PT_FEAT_DIM, PT_FEAT_DIM)
    p['cs_w1'], p['cs_b1'] = _init_linear(keys[8], NUM_QUERY, NUM_QUERY)
    p['cs_w2'], p['cs_b2'] = _init_linear(keys[9], NUM_QUERY, 1)
    rw1, rb1, rw2, rb2 = [], [], [], []
    for i in range(NUM_PREDS):
        w1, b1 = _init_linear(jax.random.fold_in(keys[10], i), PT_FEAT_DIM, PT_FEAT_DIM)
        w2, b2 = _init_linear(jax.random.fold_in(keys[11], i), PT_FEAT_DIM, 3)
        rw1.append(w1); rb1.append(b1); rw2.append(w2); rb2.append(b2)
    # stacked along a leading NUM_PREDS axis so the whole decoder runs in one pallas_call
    p['reg_w1'] = jnp.stack(rw1); p['reg_b1'] = jnp.stack(rb1)
    p['reg_w2'] = jnp.stack(rw2); p['reg_b2'] = jnp.stack(rb2)
    return p


# ----------------------------- main ------------------------------------------------------
if __name__ == "__main__":
    key = jax.random.PRNGKey(0)
    k_feat, k_ref, k_tpl, k_perm, k_par = jax.random.split(key, 5)

    mlvl_feat = jax.random.normal(k_feat, (B, N_CAMS, IN_CHANNELS, H, W), jnp.float32)

    # simple pinhole intrinsics / near-identity extrinsics per camera view
    BN = B * N_CAMS
    intr = jnp.tile(jnp.array([[100.0, 0.0, INP_W / 2.0],
                               [0.0, 100.0, INP_H / 2.0],
                               [0.0, 0.0, 1.0]], jnp.float32)[None], (BN, 1, 1))
    extr = jnp.tile(jnp.eye(4, dtype=jnp.float32)[None], (BN, 1, 1))
    extr = extr.at[:, 0, 3].set(0.05 * jnp.arange(BN, dtype=jnp.float32))

    # reference mesh vertices around z ~= 0.5 m in front of the cameras
    reference_points = jnp.concatenate(
        [jax.random.uniform(k_ref, (B, NUM_QUERY, 2), jnp.float32, -0.1, 0.1),
         jax.random.uniform(jax.random.fold_in(k_ref, 1), (B, NUM_QUERY, 1),
                            jnp.float32, 0.4, 0.6)],
        axis=-1)
    template_mesh = jax.random.uniform(k_tpl, (NUM_QUERY, 3), jnp.float32, -0.1, 0.1)

    # replacement for torch.randperm (fixed seed for determinism)
    n_points = N_CAMS * W * H * DEPTH_NUM
    perm = jax.random.permutation(k_perm, n_points)

    params = build_params(k_par)

    fwd = jax.jit(poem_forward)
    results = fwd(params, mlvl_feat, intr, extr, reference_points, template_mesh, perm)
    out = jax.block_until_ready(results['all_coords_preds'])
    assert out.shape == (NUM_PREDS, B, NUM_QUERY, 3)
    assert bool(jnp.all(jnp.isfinite(out)))
    print("KERNEL_OK")
</pallas_src>

<mosaic_0001>
module attributes {stable_mosaic.version = 11 : i64} {
  func.func @_center_shift_kernel(%arg0: i32, %arg1: memref<6x16xf32, #tpu.memory_space<vmem>>, %arg2: memref<16x16xf32, #tpu.memory_space<vmem>>, %arg3: memref<1x16xf32, #tpu.memory_space<vmem>>, %arg4: memref<16x1xf32, #tpu.memory_space<vmem>>, %arg5: memref<1x1xf32, #tpu.memory_space<vmem>>, %arg6: memref<6x1xf32, #tpu.memory_space<vmem>>) attributes {dimension_semantics = [#tpu.dimension_semantics<arbitrary>], iteration_bounds = array<i64: 1>, scalar_prefetch = 0 : i64, scratch_operands = 0 : i64, tpu.core_type = #tpu.core_type<tc>, window_params = [{pipeline_mode = #tpu.pipeline_mode<synchronous>, transform_indices = @transform_0, window_bounds = array<i64: 6, 16>}, {pipeline_mode = #tpu.pipeline_mode<synchronous>, transform_indices = @transform_1, window_bounds = array<i64: 16, 16>}, {pipeline_mode = #tpu.pipeline_mode<synchronous>, transform_indices = @transform_2, window_bounds = array<i64: 1, 16>}, {pipeline_mode = #tpu.pipeline_mode<synchronous>, transform_indices = @transform_3, window_bounds = array<i64: 16, 1>}, {pipeline_mode = #tpu.pipeline_mode<synchronous>, transform_indices = @transform_4, window_bounds = array<i64: 1, 1>}, {pipeline_mode = #tpu.pipeline_mode<synchronous>, transform_indices = @transform_5, window_bounds = array<i64: 6, 1>}]} {
    %c0 = arith.constant 0 : index
    %c0_0 = arith.constant 0 : index
    %0 = vector.load %arg1[%c0, %c0_0] : memref<6x16xf32, #tpu.memory_space<vmem>>, vector<6x16xf32>
    %c0_1 = arith.constant 0 : index
    %c0_2 = arith.constant 0 : index
    %1 = vector.load %arg2[%c0_1, %c0_2] : memref<16x16xf32, #tpu.memory_space<vmem>>, vector<16x16xf32>
    %cst = arith.constant dense<0.000000e+00> : vector<6x16xf32>
    %2 = tpu.matmul %0, %1, %cst {dimension_numbers = #tpu.dot_dimension_numbers<[1], [0], [0], [1], [0, 0, 1, 1], [], []>} : vector<6x16xf32>, vector<16x16xf32>, vector<6x16xf32> -> vector<6x16xf32>
    %c0_3 = arith.constant 0 : index
    %c0_4 = arith.constant 0 : index
    %3 = vector.load %arg3[%c0_3, %c0_4] : memref<1x16xf32, #tpu.memory_space<vmem>>, vector<1x16xf32>
    %4 = vector.broadcast %3 : vector<1x16xf32> to vector<6x16xf32>
    %5 = arith.addf %2, %4 : vector<6x16xf32>
    %cst_5 = arith.constant 0.000000e+00 : f32
    %6 = vector.broadcast %cst_5 : f32 to vector<6x16xf32>
    %7 = arith.maximumf %5, %6 : vector<6x16xf32>
    %c0_6 = arith.constant 0 : index
    %c0_7 = arith.constant 0 : index
    %8 = vector.load %arg4[%c0_6, %c0_7] : memref<16x1xf32, #tpu.memory_space<vmem>>, vector<16x1xf32>
    %cst_8 = arith.constant dense<0.000000e+00> : vector<6x1xf32>
    %9 = tpu.matmul %7, %8, %cst_8 {dimension_numbers = #tpu.dot_dimension_numbers<[1], [0], [0], [1], [0, 0, 1, 1], [], []>} : vector<6x16xf32>, vector<16x1xf32>, vector<6x1xf32> -> vector<6x1xf32>
    %c0_9 = arith.constant 0 : index
    %c0_10 = arith.constant 0 : index
    %10 = vector.load %arg5[%c0_9, %c0_10] : memref<1x1xf32, #tpu.memory_space<vmem>>, vector<1x1xf32>
    %11 = vector.broadcast %10 : vector<1x1xf32> to vector<6x1xf32>
    %12 = arith.addf %9, %11 : vector<6x1xf32>
    %c0_11 = arith.constant 0 : index
    %c0_12 = arith.constant 0 : index
    %13 = vector.load %arg6[%c0_11, %c0_12] : memref<6x1xf32, #tpu.memory_space<vmem>>, vector<6x1xf32>
    tpu.vector_store %arg6[%c0_11, %c0_12], %12 {strides = array<i32>} : memref<6x1xf32, #tpu.memory_space<vmem>>, vector<6x1xf32>,
    return
  }
  func.func @transform_0(%arg0: i32) -> (i32, i32) {
    %c0_i32 = arith.constant 0 : i32
    %c0_i32_0 = arith.constant 0 : i32
    %c0_i32_1 = arith.constant 0 : i32
    return %c0_i32, %c0_i32_0 : i32, i32
  }
  func.func @transform_1(%arg0: i32) -> (i32, i32) {
    %c0_i32 = arith.constant 0 : i32
    %c0_i32_0 = arith.constant 0 : i32
    %c0_i32_1 = arith.constant 0 : i32
    return %c0_i32, %c0_i32_0 : i32, i32
  }
  func.func @transform_2(%arg0: i32) -> (i32, i32) {
    %c0_i32 = arith.constant 0 : i32
    %c0_i32_0 = arith.constant 0 : i32
    %c0_i32_1 = arith.constant 0 : i32
    return %c0_i32, %c0_i32_0 : i32, i32
  }
  func.func @transform_3(%arg0: i32) -> (i32, i32) {
    %c0_i32 = arith.constant 0 : i32
    %c0_i32_0 = arith.constant 0 : i32
    %c0_i32_1 = arith.constant 0 : i32
    return %c0_i32, %c0_i32_0 : i32, i32
  }
  func.func @transform_4(%arg0: i32) -> (i32, i32) {
    %c0_i32 = arith.constant 0 : i32
    %c0_i32_0 = arith.constant 0 : i32
    %c0_i32_1 = arith.constant 0 : i32
    return %c0_i32, %c0_i32_0 : i32, i32
  }
  func.func @transform_5(%arg0: i32) -> (i32, i32) {
    %c0_i32 = arith.constant 0 : i32
    %c0_i32_0 = arith.constant 0 : i32
    %c0_i32_1 = arith.constant 0 : i32
    return %c0_i32, %c0_i32_0 : i32, i32
  }
}

module attributes {stable_mosaic.version = 11 : i64} {
  func.func @_fused_pixel_kernel(%arg0: i32, %arg1: memref<128x8xf32, #tpu.memory_space<vmem>>, %arg2: memref<128x12xf32, #tpu.memory_space<vmem>>, %arg3: memref<128x48xf32, #tpu.memory_space<vmem>>, %arg4: memref<8x32xf32, #tpu.memory_space<vmem>>, %arg5: memref<1x32xf32, #tpu.memory_space<vmem>>, %arg6: memref<12x64xf32, #tpu.memory_space<vmem>>, %arg7: memref<1x64xf32, #tpu.memory_space<vmem>>, %arg8: memref<64x32xf32, #tpu.memory_space<vmem>>, %arg9: memref<1x32xf32, #tpu.memory_space<vmem>>, %arg10: memref<48x32xf32, #tpu.memory_space<vmem>>, %arg11: memref<1x32xf32, #tpu.memory_space<vmem>>, %arg12: memref<128x32xf32, #tpu.memory_space<vmem>>) attributes {dimension_semantics = [#tpu.dimension_semantics<parallel>], iteration_bounds = array<i64: 2>, scalar_prefetch = 0 : i64, scratch_operands = 0 : i64, tpu.core_type = #tpu.core_type<tc>, window_params = [{transform_indices = @transform_0, window_bounds = array<i64: 128, 8>}, {transform_indices = @transform_1, window_bounds = array<i64: 128, 12>}, {transform_indices = @transform_2, window_bounds = array<i64: 128, 48>}, {pipeline_mode = #tpu.pipeline_mode<synchronous>, transform_indices = @transform_3, window_bounds = array<i64: 8, 32>}, {pipeline_mode = #tpu.pipeline_mode<synchronous>, transform_indices = @transform_4, window_bounds = array<i64: 1, 32>}, {pipeline_mode = #tpu.pipeline_mode<synchronous>, transform_indices = @transform_5, window_bounds = array<i64: 12, 64>}, {pipeline_mode = #tpu.pipeline_mode<synchronous>, transform_indices = @transform_6, window_bounds = array<i64: 1, 64>}, {pipeline_mode = #tpu.pipeline_mode<synchronous>, transform_indices = @transform_7, window_bounds = array<i64: 64, 32>}, {pipeline_mode = #tpu.pipeline_mode<synchronous>, transform_indices = @transform_8, window_bounds = array<i64: 1, 32>}, {pipeline_mode = #tpu.pipeline_mode<synchronous>, transform_indices = @transform_9, window_bounds = array<i64: 48, 32>}, {pipeline_mode = #tpu.pipeline_mode<synchronous>, transform_indices = @transform_10, window_bounds = array<i64: 1, 32>}, {transform_indices = @transform_11, window_bounds = array<i64: 128, 32>}]} {
    %c0 = arith.constant 0 : index
    %c0_0 = arith.constant 0 : index
    %0 = vector.load %arg1[%c0, %c0_0] : memref<128x8xf32, #tpu.memory_space<vmem>>, vector<128x8xf32>
    %c0_1 = arith.constant 0 : index
    %c0_2 = arith.constant 0 : index
    %1 = vector.load %arg4[%c0_1, %c0_2] : memref<8x32xf32, #tpu.memory_space<vmem>>, vector<8x32xf32>
    %cst = arith.constant dense<0.000000e+00> : vector<128x32xf32>
    %2 = tpu.matmul %0, %1, %cst {dimension_numbers = #tpu.dot_dimension_numbers<[1], [0], [0], [1], [0, 0, 1, 1], [], []>} : vector<128x8xf32>, vector<8x32xf32>, vector<128x32xf32> -> vector<128x32xf32>
    %c0_3 = arith.constant 0 : index
    %c0_4 = arith.constant 0 : index
    %3 = vector.load %arg5[%c0_3, %c0_4] : memref<1x32xf32, #tpu.memory_space<vmem>>, vector<1x32xf32>
    %4 = vector.broadcast %3 : vector<1x32xf32> to vector<128x32xf32>
    %5 = arith.addf %2, %4 : vector<128x32xf32>
    %c0_5 = arith.constant 0 : index
    %c0_6 = arith.constant 0 : index
    %6 = vector.load %arg2[%c0_5, %c0_6] : memref<128x12xf32, #tpu.memory_space<vmem>>, vector<128x12xf32>
    %cst_7 = arith.constant 0.000000e+00 : f32
    %cst_8 = arith.constant 1.000000e+00 : f32
    %7 = vector.broadcast %cst_7 : f32 to vector<128x12xf32>
    %8 = arith.maximumf %7, %6 : vector<128x12xf32>
    %9 = vector.broadcast %cst_8 : f32 to vector<128x12xf32>
    %10 = arith.minimumf %9, %8 : vector<128x12xf32>
    %cst_9 = arith.constant 9.99999974E-6 : f32
    %11 = vector.broadcast %cst_9 : f32 to vector<128x12xf32>
    %12 = arith.maximumf %11, %10 : vector<128x12xf32>
    %cst_10 = arith.constant 1.000000e+00 : f32
    %13 = vector.broadcast %cst_10 : f32 to vector<128x12xf32>
    %14 = arith.subf %13, %10 : vector<128x12xf32>
    %cst_11 = arith.constant 9.99999974E-6 : f32
    %15 = vector.broadcast %cst_11 : f32 to vector<128x12xf32>
    %16 = arith.maximumf %15, %14 : vector<128x12xf32>
    %17 = arith.divf %12, %16 : vector<128x12xf32>
    %18 = math.log %17 : vector<128x12xf32>
    %c0_12 = arith.constant 0 : index
    %c0_13 = arith.constant 0 : index
    %19 = vector.load %arg6[%c0_12, %c0_13] : memref<12x64xf32, #tpu.memory_space<vmem>>, vector<12x64xf32>
    %cst_14 = arith.constant dense<0.000000e+00> : vector<128x64xf32>
    %20 = tpu.matmul %18, %19, %cst_14 {dimension_numbers = #tpu.dot_dimension_numbers<[1], [0], [0], [1], [0, 0, 1, 1], [], []>} : vector<128x12xf32>, vector<12x64xf32>, vector<128x64xf32> -> vector<128x64xf32>
    %c0_15 = arith.constant 0 : index
    %c0_16 = arith.constant 0 : index
    %21 = vector.load %arg7[%c0_15, %c0_16] : memref<1x64xf32, #tpu.memory_space<vmem>>, vector<1x64xf32>
    %22 = vector.broadcast %21 : vector<1x64xf32> to vector<128x64xf32>
    %23 = arith.addf %20, %22 : vector<128x64xf32>
    %cst_17 = arith.constant 0.000000e+00 : f32
    %24 = vector.broadcast %cst_17 : f32 to vector<128x64xf32>
    %25 = arith.maximumf %23, %24 : vector<128x64xf32>
    %c0_18 = arith.constant 0 : index
    %c0_19 = arith.constant 0 : index
    %26 = vector.load %arg8[%c0_18, %c0_19] : memref<64x32xf32, #tpu.memory_space<vmem>>, vector<64x32xf32>
    %cst_20 = arith.constant dense<0.000000e+00> : vector<128x32xf32>
    %27 = tpu.matmul %25, %26, %cst_20 {dimension_numbers = #tpu.dot_dimension_numbers<[1], [0], [0], [1], [0, 0, 1, 1], [], []>} : vector<128x64xf32>, vector<64x32xf32>, vector<128x32xf32> -> vector<128x32xf32>
    %c0_21 = arith.constant 0 : index
    %c0_22 = arith.constant 0 : index
    %28 = vector.load %arg9[%c0_21, %c0_22] : memref<1x32xf32, #tpu.memory_space<vmem>>, vector<1x32xf32>
    %29 = vector.broadcast %28 : vector<1x32xf32> to vector<128x32xf32>
    %30 = arith.addf %27, %29 : vector<128x32xf32>
    %c0_23 = arith.constant 0 : index
    %c0_24 = arith.constant 0 : index
    %31 = vector.load %arg3[%c0_23, %c0_24] : memref<128x48xf32, #tpu.memory_space<vmem>>, vector<128x48xf32>
    %c0_25 = arith.constant 0 : index
    %c0_26 = arith.constant 0 : index
    %32 = vector.load %arg10[%c0_25, %c0_26] : memref<48x32xf32, #tpu.memory_space<vmem>>, vector<48x32xf32>
    %cst_27 = arith.constant dense<0.000000e+00> : vector<128x32xf32>
    %33 = tpu.matmul %31, %32, %cst_27 {dimension_numbers = #tpu.dot_dimension_numbers<[1], [0], [0], [1], [0, 0, 1, 1], [], []>} : vector<128x48xf32>, vector<48x32xf32>, vector<128x32xf32> -> vector<128x32xf32>
    %c0_28 = arith.constant 0 : index
    %c0_29 = arith.constant 0 : index
    %34 = vector.load %arg11[%c0_28, %c0_29] : memref<1x32xf32, #tpu.memory_space<vmem>>, vector<1x32xf32>
    %35 = vector.broadcast %34 : vector<1x32xf32> to vector<128x32xf32>
    %36 = arith.addf %33, %35 : vector<128x32xf32>
    %37 = arith.addf %5, %30 : vector<128x32xf32>
    %38 = arith.addf %37, %36 : vector<128x32xf32>
    %c0_30 = arith.constant 0 : index
    %c0_31 = arith.constant 0 : index
    %39 = vector.load %arg12[%c0_30, %c0_31] : memref<128x32xf32, #tpu.memory_space<vmem>>, vector<128x32xf32>
    tpu.vector_store %arg12[%c0_30, %c0_31], %38 {strides = array<i32>} : memref<128x32xf32, #tpu.memory_space<vmem>>, vector<128x32xf32>,
    return
  }
  func.func @transform_0(%arg0: i32) -> (i32, i32) {
    %c0_i32 = arith.constant 0 : i32
    %c0_i32_0 = arith.constant 0 : i32
    return %arg0, %c0_i32 : i32, i32
  }
  func.func @transform_1(%arg0: i32) -> (i32, i32) {
    %c0_i32 = arith.constant 0 : i32
    %c0_i32_0 = arith.constant 0 : i32
    return %arg0, %c0_i32 : i32, i32
  }
  func.func @transform_2(%arg0: i32) -> (i32, i32) {
    %c0_i32 = arith.constant 0 : i32
    %c0_i32_0 = arith.constant 0 : i32
    return %arg0, %c0_i32 : i32, i32
  }
  func.func @transform_3(%arg0: i32) -> (i32, i32) {
    %c0_i32 = arith.constant 0 : i32
    %c0_i32_0 = arith.constant 0 : i32
    %c0_i32_1 = arith.constant 0 : i32
    return %c0_i32, %c0_i32_0 : i32, i32
  }
  func.func @transform_4(%arg0: i32) -> (i32, i32) {
    %c0_i32 = arith.constant 0 : i32
    %c0_i32_0 = arith.constant 0 : i32
    %c0_i32_1 = arith.constant 0 : i32
    return %c0_i32, %c0_i32_0 : i32, i32
  }
  func.func @transform_5(%arg0: i32) -> (i32, i32) {
    %c0_i32 = arith.constant 0 : i32
    %c0_i32_0 = arith.constant 0 : i32
    %c0_i32_1 = arith.constant 0 : i32
    return %c0_i32, %c0_i32_0 : i32, i32
  }
  func.func @transform_6(%arg0: i32) -> (i32, i32) {
    %c0_i32 = arith.constant 0 : i32
    %c0_i32_0 = arith.constant 0 : i32
    %c0_i32_1 = arith.constant 0 : i32
    return %c0_i32, %c0_i32_0 : i32, i32
  }
  func.func @transform_7(%arg0: i32) -> (i32, i32) {
    %c0_i32 = arith.constant 0 : i32
    %c0_i32_0 = arith.constant 0 : i32
    %c0_i32_1 = arith.constant 0 : i32
    return %c0_i32, %c0_i32_0 : i32, i32
  }
  func.func @transform_8(%arg0: i32) -> (i32, i32) {
    %c0_i32 = arith.constant 0 : i32
    %c0_i32_0 = arith.constant 0 : i32
    %c0_i32_1 = arith.constant 0 : i32
    return %c0_i32, %c0_i32_0 : i32, i32
  }
  func.func @transform_9(%arg0: i32) -> (i32, i32) {
    %c0_i32 = arith.constant 0 : i32
    %c0_i32_0 = arith.constant 0 : i32
    %c0_i32_1 = arith.constant 0 : i32
    return %c0_i32, %c0_i32_0 : i32, i32
  }
  func.func @transform_10(%arg0: i32) -> (i32, i32) {
    %c0_i32 = arith.constant 0 : i32
    %c0_i32_0 = arith.constant 0 : i32
    %c0_i32_1 = arith.constant 0 : i32
    return %c0_i32, %c0_i32_0 : i32, i32
  }
  func.func @transform_11(%arg0: i32) -> (i32, i32) {
    %c0_i32 = arith.constant 0 : i32
    %c0_i32_0 = arith.constant 0 : i32
    return %arg0, %c0_i32 : i32, i32
  }
}

module attributes {stable_mosaic.version = 11 : i64} {
  func.func @_decoder_kernel(%arg0: i32, %arg1: memref<1x16x54xf32, #tpu.memory_space<vmem>>, %arg2: memref<1x64x8xf32, #tpu.memory_space<vmem>>, %arg3: memref<1x3x64xf32, #tpu.memory_space<vmem>>, %arg4: memref<1x16x3xf32, #tpu.memory_space<vmem>>, %arg5: memref<54x32xf32, #tpu.memory_space<vmem>>, %arg6: memref<1x32xf32, #tpu.memory_space<vmem>>, %arg7: memref<32x32xf32, #tpu.memory_space<vmem>>, %arg8: memref<1x32xf32, #tpu.memory_space<vmem>>, %arg9: memref<8x32xf32, #tpu.memory_space<vmem>>, %arg10: memref<1x32xf32, #tpu.memory_space<vmem>>, %arg11: memref<2x32x32xf32, #tpu.memory_space<vmem>>, %arg12: memref<2x1x32xf32, #tpu.memory_space<vmem>>, %arg13: memref<2x32x3xf32, #tpu.memory_space<vmem>>, %arg14: memref<2x1x3xf32, #tpu.memory_space<vmem>>, %arg15: memref<2x1x16x3xf32, #tpu.memory_space<vmem>>) attributes {dimension_semantics = [#tpu.dimension_semantics<parallel>], iteration_bounds = array<i64: 2>, scalar_prefetch = 0 : i64, scratch_operands = 0 : i64, tpu.core_type = #tpu.core_type<tc>, window_params = [{transform_indices = @transform_0, window_bounds = array<i64: 1, 16, 54>}, {transform_indices = @transform_1, window_bounds = array<i64: 1, 64, 8>}, {transform_indices = @transform_2, window_bounds = array<i64: 1, 3, 64>}, {transform_indices = @transform_3, window_bounds = array<i64: 1, 16, 3>}, {pipeline_mode = #tpu.pipeline_mode<synchronous>, transform_indices = @transform_4, window_bounds = array<i64: 54, 32>}, {pipeline_mode = #tpu.pipeline_mode<synchronous>, transform_indices = @transform_5, window_bounds = array<i64: 1, 32>}, {pipeline_mode = #tpu.pipeline_mode<synchronous>, transform_indices = @transform_6, window_bounds = array<i64: 32, 32>}, {pipeline_mode = #tpu.pipeline_mode<synchronous>, transform_indices = @transform_7, window_bounds = array<i64: 1, 32>}, {pipeline_mode = #tpu.pipeline_mode<synchronous>, transform_indices = @transform_8, window_bounds = array<i64: 8, 32>}, {pipeline_mode = #tpu.pipeline_mode<synchronous>, transform_indices = @transform_9, window_bounds = array<i64: 1, 32>}, {pipeline_mode = #tpu.pipeline_mode<synchronous>, transform_indices = @transform_10, window_bounds = array<i64: 2, 32, 32>}, {pipeline_mode = #tpu.pipeline_mode<synchronous>, transform_indices = @transform_11, window_bounds = array<i64: 2, 1, 32>}, {pipeline_mode = #tpu.pipeline_mode<synchronous>, transform_indices = @transform_12, window_bounds = array<i64: 2, 32, 3>}, {pipeline_mode = #tpu.pipeline_mode<synchronous>, transform_indices = @transform_13, window_bounds = array<i64: 2, 1, 3>}, {transform_indices = @transform_14, window_bounds = array<i64: 2, 1, 16, 3>}]} {
    %c0 = arith.constant 0 : index
    %c0_0 = arith.constant 0 : index
    %c0_1 = arith.constant 0 : index
    %0 = vector.load %arg1[%c0, %c0_0, %c0_1] : memref<1x16x54xf32, #tpu.memory_space<vmem>>, vector<1x16x54xf32>
    %1 = vector.shape_cast %0 : vector<1x16x54xf32> to vector<16x54xf32>
    %c0_2 = arith.constant 0 : index
    %c0_3 = arith.constant 0 : index
    %2 = vector.load %arg5[%c0_2, %c0_3] : memref<54x32xf32, #tpu.memory_space<vmem>>, vector<54x32xf32>
    %cst = arith.constant dense<0.000000e+00> : vector<16x32xf32>
    %3 = tpu.matmul %1, %2, %cst {dimension_numbers = #tpu.dot_dimension_numbers<[1], [0], [0], [1], [0, 0, 1, 1], [], []>} : vector<16x54xf32>, vector<54x32xf32>, vector<16x32xf32> -> vector<16x32xf32>
    %c0_4 = arith.constant 0 : index
    %c0_5 = arith.constant 0 : index
    %4 = vector.load %arg6[%c0_4, %c0_5] : memref<1x32xf32, #tpu.memory_space<vmem>>, vector<1x32xf32>
    %5 = vector.broadcast %4 : vector<1x32xf32> to vector<16x32xf32>
    %6 = arith.addf %3, %5 : vector<16x32xf32>
    %cst_6 = arith.constant 0.000000e+00 : f32
    %7 = vector.broadcast %cst_6 : f32 to vector<16x32xf32>
    %8 = arith.maximumf %6, %7 : vector<16x32xf32>
    %c0_7 = arith.constant 0 : index
    %c0_8 = arith.constant 0 : index
    %9 = vector.load %arg7[%c0_7, %c0_8] : memref<32x32xf32, #tpu.memory_space<vmem>>, vector<32x32xf32>
    %cst_9 = arith.constant dense<0.000000e+00> : vector<16x32xf32>
    %10 = tpu.matmul %8, %9, %cst_9 {dimension_numbers = #tpu.dot_dimension_numbers<[1], [0], [0], [1], [0, 0, 1, 1], [], []>} : vector<16x32xf32>, vector<32x32xf32>, vector<16x32xf32> -> vector<16x32xf32>
    %c0_10 = arith.constant 0 : index
    %c0_11 = arith.constant 0 : index
    %11 = vector.load %arg8[%c0_10, %c0_11] : memref<1x32xf32, #tpu.memory_space<vmem>>, vector<1x32xf32>
    %12 = vector.broadcast %11 : vector<1x32xf32> to vector<16x32xf32>
    %13 = arith.addf %10, %12 : vector<16x32xf32>
    %c0_12 = arith.constant 0 : index
    %c0_13 = arith.constant 0 : index
    %c0_14 = arith.constant 0 : index
    %14 = vector.load %arg2[%c0_12, %c0_13, %c0_14] : memref<1x64x8xf32, #tpu.memory_space<vmem>>, vector<1x64x8xf32>
    %15 = vector.shape_cast %14 : vector<1x64x8xf32> to vector<64x8xf32>
    %c0_15 = arith.constant 0 : index
    %c0_16 = arith.constant 0 : index
    %16 = vector.load %arg9[%c0_15, %c0_16] : memref<8x32xf32, #tpu.memory_space<vmem>>, vector<8x32xf32>
    %cst_17 = arith.constant dense<0.000000e+00> : vector<64x32xf32>
    %17 = tpu.matmul %15, %16, %cst_17 {dimension_numbers = #tpu.dot_dimension_numbers<[1], [0], [0], [1], [0, 0, 1, 1], [], []>} : vector<64x8xf32>, vector<8x32xf32>, vector<64x32xf32> -> vector<64x32xf32>
    %c0_18 = arith.constant 0 : index
    %c0_19 = arith.constant 0 : index
    %18 = vector.load %arg10[%c0_18, %c0_19] : memref<1x32xf32, #tpu.memory_space<vmem>>, vector<1x32xf32>
    %19 = vector.broadcast %18 : vector<1x32xf32> to vector<64x32xf32>
    %20 = arith.addf %17, %19 : vector<64x32xf32>
    %21 = tpu.transpose %20, [1, 0] : vector<64x32xf32> -> vector<32x64xf32>
    %c0_20 = arith.constant 0 : index
    %c0_21 = arith.constant 0 : index
    %c0_22 = arith.constant 0 : index
    %22 = vector.load %arg4[%c0_20, %c0_21, %c0_22] : memref<1x16x3xf32, #tpu.memory_space<vmem>>, vector<1x16x3xf32>
    %23 = vector.shape_cast %22 : vector<1x16x3xf32> to vector<16x3xf32>
    %c0_23 = arith.constant 0 : index
    %c0_24 = arith.constant 0 : index
    %c0_25 = arith.constant 0 : index
    %24 = vector.load %arg3[%c0_23, %c0_24, %c0_25] : memref<1x3x64xf32, #tpu.memory_space<vmem>>, vector<1x3x64xf32>
    %25 = vector.shape_cast %24 : vector<1x3x64xf32> to vector<3x64xf32>
    %26 = vector.extract_strided_slice %23 {offsets = [0, 0], sizes = [16, 1], strides = [1, 1]} : vector<16x3xf32> to vector<16x1xf32>
    %27 = vector.extract_strided_slice %25 {offsets = [0, 0], sizes = [1, 64], strides = [1, 1]} : vector<3x64xf32> to vector<1x64xf32>
    %28 = vector.broadcast %26 : vector<16x1xf32> to vector<16x64xf32>
    %29 = vector.broadcast %27 : vector<1x64xf32> to vector<16x64xf32>
    %30 = arith.subf %28, %29 : vector<16x64xf32>
    %31 = arith.mulf %30, %30 : vector<16x64xf32>
    %32 = vector.extract_strided_slice %23 {offsets = [0, 1], sizes = [16, 1], strides = [1, 1]} : vector<16x3xf32> to vector<16x1xf32>
    %33 = vector.extract_strided_slice %25 {offsets = [1, 0], sizes = [1, 64], strides = [1, 1]} : vector<3x64xf32> to vector<1x64xf32>
    %34 = vector.broadcast %32 : vector<16x1xf32> to vector<16x64xf32>
    %35 = vector.broadcast %33 : vector<1x64xf32> to vector<16x64xf32>
    %36 = arith.subf %34, %35 : vector<16x64xf32>
    %37 = arith.mulf %36, %36 : vector<16x64xf32>
    %38 = arith.addf %31, %37 : vector<16x64xf32>
    %39 = vector.extract_strided_slice %23 {offsets = [0, 2], sizes = [16, 1], strides = [1, 1]} : vector<16x3xf32> to vector<16x1xf32>
    %40 = vector.extract_strided_slice %25 {offsets = [2, 0], sizes = [1, 64], strides = [1, 1]} : vector<3x64xf32> to vector<1x64xf32>
    %41 = vector.broadcast %39 : vector<16x1xf32> to vector<16x64xf32>
    %42 = vector.broadcast %40 : vector<1x64xf32> to vector<16x64xf32>
    %43 = arith.subf %41, %42 : vector<16x64xf32>
    %44 = arith.mulf %43, %43 : vector<16x64xf32>
    %45 = arith.addf %38, %44 : vector<16x64xf32>
    %c0_26 = arith.constant 0 : index
    %c0_27 = arith.constant 0 : index
    %c0_28 = arith.constant 0 : index
    %46 = vector.load %arg11[%c0_26, %c0_27, %c0_28] : memref<2x32x32xf32, #tpu.memory_space<vmem>>, vector<2x32x32xf32>
    %c0_29 = arith.constant 0 : index
    %c0_30 = arith.constant 0 : index
    %c0_31 = arith.constant 0 : index
    %47 = vector.load %arg12[%c0_29, %c0_30, %c0_31] : memref<2x1x32xf32, #tpu.memory_space<vmem>>, vector<2x1x32xf32>
    %c0_32 = arith.constant 0 : index
    %c0_33 = arith.constant 0 : index
    %c0_34 = arith.constant 0 : index
    %48 = vector.load %arg13[%c0_32, %c0_33, %c0_34] : memref<2x32x3xf32, #tpu.memory_space<vmem>>, vector<2x32x3xf32>
    %c0_35 = arith.constant 0 : index
    %c0_36 = arith.constant 0 : index
    %c0_37 = arith.constant 0 : index
    %49 = vector.load %arg14[%c0_35, %c0_36, %c0_37] : memref<2x1x3xf32, #tpu.memory_space<vmem>>, vector<2x1x3xf32>
    %cst_38 = arith.constant dense<0.000000e+00> : vector<16x64xf32>
    %50 = tpu.matmul %13, %21, %cst_38 {dimension_numbers = #tpu.dot_dimension_numbers<[1], [0], [0], [1], [0, 0, 1, 1], [], []>} : vector<16x32xf32>, vector<32x64xf32>, vector<16x64xf32> -> vector<16x64xf32>
    %cst_39 = arith.constant 0.176776692 : f32
    %51 = vector.broadcast %cst_39 : f32 to vector<16x64xf32>
    %52 = arith.mulf %50, %51 : vector<16x64xf32>
    %53 = arith.subf %52, %45 : vector<16x64xf32>
    %cst_40 = arith.constant dense<0xFF800000> : vector<16xf32>
    %54 = vector.multi_reduction <maximumf>, %53, %cst_40 [1] : vector<16x64xf32> to vector<16xf32>
    %55 = vector.shape_cast %54 : vector<16xf32> to vector<16x1xf32>
    %56 = vector.broadcast %55 : vector<16x1xf32> to vector<16x64xf32>
    %57 = arith.subf %53, %56 : vector<16x64xf32>
    %58 = math.exp %57 : vector<16x64xf32>
    %cst_41 = arith.constant dense<0.000000e+00> : vector<16xf32>
    %59 = vector.multi_reduction <add>, %58, %cst_41 [1] : vector<16x64xf32> to vector<16xf32>
    %60 = vector.shape_cast %59 : vector<16xf32> to vector<16x1xf32>
    %61 = tpu.reciprocal %60 {approx = true} : vector<16x1xf32> -> vector<16x1xf32>
    %62 = vector.broadcast %61 : vector<16x1xf32> to vector<16x64xf32>
    %63 = arith.mulf %58, %62 : vector<16x64xf32>
    %cst_42 = arith.constant dense<0.000000e+00> : vector<16x32xf32>
    %64 = tpu.matmul %63, %20, %cst_42 {dimension_numbers = #tpu.dot_dimension_numbers<[1], [0], [0], [1], [0, 0, 1, 1], [], []>} : vector<16x64xf32>, vector<64x32xf32>, vector<16x32xf32> -> vector<16x32xf32>
    %65 = arith.addf %13, %64 : vector<16x32xf32>
    %66 = vector.extract_strided_slice %46 {offsets = [0, 0, 0], sizes = [1, 32, 32], strides = [1, 1, 1]} : vector<2x32x32xf32> to vector<1x32x32xf32>
    %67 = vector.shape_cast %66 : vector<1x32x32xf32> to vector<32x32xf32>
    %cst_43 = arith.constant dense<0.000000e+00> : vector<16x32xf32>
    %68 = tpu.matmul %65, %67, %cst_43 {dimension_numbers = #tpu.dot_dimension_numbers<[1], [0], [0], [1], [0, 0, 1, 1], [], []>} : vector<16x32xf32>, vector<32x32xf32>, vector<16x32xf32> -> vector<16x32xf32>
    %69 = vector.extract_strided_slice %47 {offsets = [0, 0, 0], sizes = [1, 1, 32], strides = [1, 1, 1]} : vector<2x1x32xf32> to vector<1x1x32xf32>
    %70 = vector.shape_cast %69 : vector<1x1x32xf32> to vector<1x32xf32>
    %71 = vector.broadcast %70 : vector<1x32xf32> to vector<16x32xf32>
    %72 = arith.addf %68, %71 : vector<16x32xf32>
    %cst_44 = arith.constant 0.000000e+00 : f32
    %73 = vector.broadcast %cst_44 : f32 to vector<16x32xf32>
    %74 = arith.maximumf %72, %73 : vector<16x32xf32>
    %75 = vector.extract_strided_slice %48 {offsets = [0, 0, 0], sizes = [1, 32, 3], strides = [1, 1, 1]} : vector<2x32x3xf32> to vector<1x32x3xf32>
    %76 = vector.shape_cast %75 : vector<1x32x3xf32> to vector<32x3xf32>
    %cst_45 = arith.constant dense<0.000000e+00> : vector<16x3xf32>
    %77 = tpu.matmul %74, %76, %cst_45 {dimension_numbers = #tpu.dot_dimension_numbers<[1], [0], [0], [1], [0, 0, 1, 1], [], []>} : vector<16x32xf32>, vector<32x3xf32>, vector<16x3xf32> -> vector<16x3xf32>
    %78 = vector.extract_strided_slice %49 {offsets = [0, 0, 0], sizes = [1, 1, 3], strides = [1, 1, 1]} : vector<2x1x3xf32> to vector<1x1x3xf32>
    %79 = vector.shape_cast %78 : vector<1x1x3xf32> to vector<1x3xf32>
    %80 = vector.broadcast %79 : vector<1x3xf32> to vector<16x3xf32>
    %81 = arith.addf %77, %80 : vector<16x3xf32>
    %cst_46 = arith.constant 0.000000e+00 : f32
    %cst_47 = arith.constant 1.000000e+00 : f32
    %82 = vector.broadcast %cst_46 : f32 to vector<16x3xf32>
    %83 = arith.maximumf %82, %23 : vector<16x3xf32>
    %84 = vector.broadcast %cst_47 : f32 to vector<16x3xf32>
    %85 = arith.minimumf %84, %83 : vector<16x3xf32>
    %cst_48 = arith.constant 9.99999974E-6 : f32
    %86 = vector.broadcast %cst_48 : f32 to vector<16x3xf32>
    %87 = arith.maximumf %86, %85 : vector<16x3xf32>
    %cst_49 = arith.constant 1.000000e+00 : f32
    %88 = vector.broadcast %cst_49 : f32 to vector<16x3xf32>
    %89 = arith.subf %88, %85 : vector<16x3xf32>
    %cst_50 = arith.constant 9.99999974E-6 : f32
    %90 = vector.broadcast %cst_50 : f32 to vector<16x3xf32>
    %91 = arith.maximumf %90, %89 : vector<16x3xf32>
    %92 = arith.divf %87, %91 : vector<16x3xf32>
    %93 = math.log %92 : vector<16x3xf32>
    %94 = arith.addf %93, %81 : vector<16x3xf32>
    %cst_51 = arith.constant 0.000000e+00 : f32
    %95 = vector.broadcast %cst_51 : f32 to vector<16x3xf32>
    %96 = arith.subf %95, %94 : vector<16x3xf32>
    %97 = math.exp %96 : vector<16x3xf32>
    %cst_52 = arith.constant 1.000000e+00 : f32
    %98 = vector.broadcast %cst_52 : f32 to vector<16x3xf32>
    %99 = arith.addf %98, %97 : vector<16x3xf32>
    %cst_53 = arith.constant 1.000000e+00 : f32
    %100 = vector.broadcast %cst_53 : f32 to vector<16x3xf32>
    %101 = arith.divf %100, %99 : vector<16x3xf32>
    %102 = vector.shape_cast %101 : vector<16x3xf32> to vector<1x1x16x3xf32>
    %cst_54 = arith.constant dense<0.000000e+00> : vector<16x64xf32>
    %103 = tpu.matmul %65, %21, %cst_54 {dimension_numbers = #tpu.dot_dimension_numbers<[1], [0], [0], [1], [0, 0, 1, 1], [], []>} : vector<16x32xf32>, vector<32x64xf32>, vector<16x64xf32> -> vector<16x64xf32>
    %cst_55 = arith.constant 0.176776692 : f32
    %104 = vector.broadcast %cst_55 : f32 to vector<16x64xf32>
    %105 = arith.mulf %103, %104 : vector<16x64xf32>
    %106 = arith.subf %105, %45 : vector<16x64xf32>
    %cst_56 = arith.constant dense<0xFF800000> : vector<16xf32>
    %107 = vector.multi_reduction <maximumf>, %106, %cst_56 [1] : vector<16x64xf32> to vector<16xf32>
    %108 = vector.shape_cast %107 : vector<16xf32> to vector<16x1xf32>
    %109 = vector.broadcast %108 : vector<16x1xf32> to vector<16x64xf32>
    %110 = arith.subf %106, %109 : vector<16x64xf32>
    %111 = math.exp %110 : vector<16x64xf32>
    %cst_57 = arith.constant dense<0.000000e+00> : vector<16xf32>
    %112 = vector.multi_reduction <add>, %111, %cst_57 [1] : vector<16x64xf32> to vector<16xf32>
    %113 = vector.shape_cast %112 : vector<16xf32> to vector<16x1xf32>
    %114 = tpu.reciprocal %113 {approx = true} : vector<16x1xf32> -> vector<16x1xf32>
    %115 = vector.broadcast %114 : vector<16x1xf32> to vector<16x64xf32>
    %116 = arith.mulf %111, %115 : vector<16x64xf32>
    %cst_58 = arith.constant dense<0.000000e+00> : vector<16x32xf32>
    %117 = tpu.matmul %116, %20, %cst_58 {dimension_numbers = #tpu.dot_dimension_numbers<[1], [0], [0], [1], [0, 0, 1, 1], [], []>} : vector<16x64xf32>, vector<64x32xf32>, vector<16x32xf32> -> vector<16x32xf32>
    %118 = arith.addf %65, %117 : vector<16x32xf32>
    %119 = vector.extract_strided_slice %46 {offsets = [1, 0, 0], sizes = [1, 32, 32], strides = [1, 1, 1]} : vector<2x32x32xf32> to vector<1x32x32xf32>
    %120 = vector.shape_cast %119 : vector<1x32x32xf32> to vector<32x32xf32>
    %cst_59 = arith.constant dense<0.000000e+00> : vector<16x32xf32>
    %121 = tpu.matmul %118, %120, %cst_59 {dimension_numbers = #tpu.dot_dimension_numbers<[1], [0], [0], [1], [0, 0, 1, 1], [], []>} : vector<16x32xf32>, vector<32x32xf32>, vector<16x32xf32> -> vector<16x32xf32>
    %122 = vector.extract_strided_slice %47 {offsets = [1, 0, 0], sizes = [1, 1, 32], strides = [1, 1, 1]} : vector<2x1x32xf32> to vector<1x1x32xf32>
    %123 = vector.shape_cast %122 : vector<1x1x32xf32> to vector<1x32xf32>
    %124 = vector.broadcast %123 : vector<1x32xf32> to vector<16x32xf32>
    %125 = arith.addf %121, %124 : vector<16x32xf32>
    %cst_60 = arith.constant 0.000000e+00 : f32
    %126 = vector.broadcast %cst_60 : f32 to vector<16x32xf32>
    %127 = arith.maximumf %125, %126 : vector<16x32xf32>
    %128 = vector.extract_strided_slice %48 {offsets = [1, 0, 0], sizes = [1, 32, 3], strides = [1, 1, 1]} : vector<2x32x3xf32> to vector<1x32x3xf32>
    %129 = vector.shape_cast %128 : vector<1x32x3xf32> to vector<32x3xf32>
    %cst_61 = arith.constant dense<0.000000e+00> : vector<16x3xf32>
    %130 = tpu.matmul %127, %129, %cst_61 {dimension_numbers = #tpu.dot_dimension_numbers<[1], [0], [0], [1], [0, 0, 1, 1], [], []>} : vector<16x32xf32>, vector<32x3xf32>, vector<16x3xf32> -> vector<16x3xf32>
    %131 = vector.extract_strided_slice %49 {offsets = [1, 0, 0], sizes = [1, 1, 3], strides = [1, 1, 1]} : vector<2x1x3xf32> to vector<1x1x3xf32>
    %132 = vector.shape_cast %131 : vector<1x1x3xf32> to vector<1x3xf32>
    %133 = vector.broadcast %132 : vector<1x3xf32> to vector<16x3xf32>
    %134 = arith.addf %130, %133 : vector<16x3xf32>
    %cst_62 = arith.constant 0.000000e+00 : f32
    %cst_63 = arith.constant 1.000000e+00 : f32
    %135 = vector.broadcast %cst_62 : f32 to vector<16x3xf32>
    %136 = arith.maximumf %135, %101 : vector<16x3xf32>
    %137 = vector.broadcast %cst_63 : f32 to vector<16x3xf32>
    %138 = arith.minimumf %137, %136 : vector<16x3xf32>
    %cst_64 = arith.constant 9.99999974E-6 : f32
    %139 = vector.broadcast %cst_64 : f32 to vector<16x3xf32>
    %140 = arith.maximumf %139, %138 : vector<16x3xf32>
    %cst_65 = arith.constant 1.000000e+00 : f32
    %141 = vector.broadcast %cst_65 : f32 to vector<16x3xf32>
    %142 = arith.subf %141, %138 : vector<16x3xf32>
    %cst_66 = arith.constant 9.99999974E-6 : f32
    %143 = vector.broadcast %cst_66 : f32 to vector<16x3xf32>
    %144 = arith.maximumf %143, %142 : vector<16x3xf32>
    %145 = arith.divf %140, %144 : vector<16x3xf32>
    %146 = math.log %145 : vector<16x3xf32>
    %147 = arith.addf %146, %134 : vector<16x3xf32>
    %cst_67 = arith.constant 0.000000e+00 : f32
    %148 = vector.broadcast %cst_67 : f32 to vector<16x3xf32>
    %149 = arith.subf %148, %147 : vector<16x3xf32>
    %150 = math.exp %149 : vector<16x3xf32>
    %cst_68 = arith.constant 1.000000e+00 : f32
    %151 = vector.broadcast %cst_68 : f32 to vector<16x3xf32>
    %152 = arith.addf %151, %150 : vector<16x3xf32>
    %cst_69 = arith.constant 1.000000e+00 : f32
    %153 = vector.broadcast %cst_69 : f32 to vector<16x3xf32>
    %154 = arith.divf %153, %152 : vector<16x3xf32>
    %155 = vector.shape_cast %154 : vector<16x3xf32> to vector<1x1x16x3xf32>
    %156 = tpu.concatenate %102, %155 in 0 : vector<1x1x16x3xf32>, vector<1x1x16x3xf32> -> vector<2x1x16x3xf32>
    %157 = arith.cmpf one, %156, %156 : vector<2x1x16x3xf32>
    %cst_70 = arith.constant 0.000000e+00 : f32
    %158 = vector.broadcast %cst_70 : f32 to vector<2x1x16x3xf32>
    %159 = arith.select %157, %158, %156 : vector<2x1x16x3xi1>, vector<2x1x16x3xf32>
    %cst_71 = arith.constant -3.40282347E+38 : f32
    %cst_72 = arith.constant 3.40282347E+38 : f32
    %160 = vector.broadcast %cst_71 : f32 to vector<2x1x16x3xf32>
    %161 = arith.maximumf %160, %159 : vector<2x1x16x3xf32>
    %162 = vector.broadcast %cst_72 : f32 to vector<2x1x16x3xf32>
    %163 = arith.minimumf %162, %161 : vector<2x1x16x3xf32>
    %164 = vector.extract_strided_slice %163 {offsets = [0, 0, 0, 0], sizes = [2, 1, 16, 1], strides = [1, 1, 1, 1]} : vector<2x1x16x3xf32> to vector<2x1x16x1xf32>
    %cst_73 = arith.constant 2.000000e+00 : f32
    %165 = vector.broadcast %cst_73 : f32 to vector<2x1x16x1xf32>
    %166 = arith.mulf %164, %165 : vector<2x1x16x1xf32>
    %cst_74 = arith.constant -1.000000e+00 : f32
    %167 = vector.broadcast %cst_74 : f32 to vector<2x1x16x1xf32>
    %168 = arith.addf %166, %167 : vector<2x1x16x1xf32>
    %169 = vector.extract_strided_slice %163 {offsets = [0, 0, 0, 1], sizes = [2, 1, 16, 1], strides = [1, 1, 1, 1]} : vector<2x1x16x3xf32> to vector<2x1x16x1xf32>
    %cst_75 = arith.constant 2.000000e+00 : f32
    %170 = vector.broadcast %cst_75 : f32 to vector<2x1x16x1xf32>
    %171 = arith.mulf %169, %170 : vector<2x1x16x1xf32>
    %cst_76 = arith.constant -1.000000e+00 : f32
    %172 = vector.broadcast %cst_76 : f32 to vector<2x1x16x1xf32>
    %173 = arith.addf %171, %172 : vector<2x1x16x1xf32>
    %174 = vector.extract_strided_slice %163 {offsets = [0, 0, 0, 2], sizes = [2, 1, 16, 1], strides = [1, 1, 1, 1]} : vector<2x1x16x3xf32> to vector<2x1x16x1xf32>
    %cst_77 = arith.constant 1.500000e+00 : f32
    %175 = vector.broadcast %cst_77 : f32 to vector<2x1x16x1xf32>
    %176 = arith.mulf %174, %175 : vector<2x1x16x1xf32>
    %cst_78 = arith.constant 0.000000e+00 : f32
    %177 = vector.broadcast %cst_78 : f32 to vector<2x1x16x1xf32>
    %178 = arith.addf %176, %177 : vector<2x1x16x1xf32>
    %179 = tpu.concatenate %168, %173, %178 in 3 : vector<2x1x16x1xf32>, vector<2x1x16x1xf32>, vector<2x1x16x1xf32> -> vector<2x1x16x3xf32>
    %c0_79 = arith.constant 0 : index
    %c0_80 = arith.constant 0 : index
    %c0_81 = arith.constant 0 : index
    %c0_82 = arith.constant 0 : index
    %180 = vector.load %arg15[%c0_79, %c0_80, %c0_81, %c0_82] : memref<2x1x16x3xf32, #tpu.memory_space<vmem>>, vector<2x1x16x3xf32>
    tpu.vector_store %arg15[%c0_79, %c0_80, %c0_81, %c0_82], %179 {strides = array<i32>} : memref<2x1x16x3xf32, #tpu.memory_space<vmem>>, vector<2x1x16x3xf32>,
    return
  }
  func.func @transform_0(%arg0: i32) -> (i32, i32, i32) {
    %c0_i32 = arith.constant 0 : i32
    %c0_i32_0 = arith.constant 0 : i32
    %c0_i32_1 = arith.constant 0 : i32
    return %arg0, %c0_i32, %c0_i32_0 : i32, i32, i32
  }
  func.func @transform_1(%arg0: i32) -> (i32, i32, i32) {
    %c0_i32 = arith.constant 0 : i32
    %c0_i32_0 = arith.constant 0 : i32
    %c0_i32_1 = arith.constant 0 : i32
    return %arg0, %c0_i32, %c0_i32_0 : i32, i32, i32
  }
  func.func @transform_2(%arg0: i32) -> (i32, i32, i32) {
    %c0_i32 = arith.constant 0 : i32
    %c0_i32_0 = arith.constant 0 : i32
    %c0_i32_1 = arith.constant 0 : i32
    return %arg0, %c0_i32, %c0_i32_0 : i32, i32, i32
  }
  func.func @transform_3(%arg0: i32) -> (i32, i32, i32) {
    %c0_i32 = arith.constant 0 : i32
    %c0_i32_0 = arith.constant 0 : i32
    %c0_i32_1 = arith.constant 0 : i32
    return %arg0, %c0_i32, %c0_i32_0 : i32, i32, i32
  }
  func.func @transform_4(%arg0: i32) -> (i32, i32) {
    %c0_i32 = arith.constant 0 : i32
    %c0_i32_0 = arith.constant 0 : i32
    %c0_i32_1 = arith.constant 0 : i32
    return %c0_i32, %c0_i32_0 : i32, i32
  }
  func.func @transform_5(%arg0: i32) -> (i32, i32) {
    %c0_i32 = arith.constant 0 : i32
    %c0_i32_0 = arith.constant 0 : i32
    %c0_i32_1 = arith.constant 0 : i32
    return %c0_i32, %c0_i32_0 : i32, i32
  }
  func.func @transform_6(%arg0: i32) -> (i32, i32) {
    %c0_i32 = arith.constant 0 : i32
    %c0_i32_0 = arith.constant 0 : i32
    %c0_i32_1 = arith.constant 0 : i32
    return %c0_i32, %c0_i32_0 : i32, i32
  }
  func.func @transform_7(%arg0: i32) -> (i32, i32) {
    %c0_i32 = arith.constant 0 : i32
    %c0_i32_0 = arith.constant 0 : i32
    %c0_i32_1 = arith.constant 0 : i32
    return %c0_i32, %c0_i32_0 : i32, i32
  }
  func.func @transform_8(%arg0: i32) -> (i32, i32) {
    %c0_i32 = arith.constant 0 : i32
    %c0_i32_0 = arith.constant 0 : i32
    %c0_i32_1 = arith.constant 0 : i32
    return %c0_i32, %c0_i32_0 : i32, i32
  }
  func.func @transform_9(%arg0: i32) -> (i32, i32) {
    %c0_i32 = arith.constant 0 : i32
    %c0_i32_0 = arith.constant 0 : i32
    %c0_i32_1 = arith.constant 0 : i32
    return %c0_i32, %c0_i32_0 : i32, i32
  }
  func.func @transform_10(%arg0: i32) -> (i32, i32, i32) {
    %c0_i32 = arith.constant 0 : i32
    %c0_i32_0 = arith.constant 0 : i32
    %c0_i32_1 = arith.constant 0 : i32
    %c0_i32_2 = arith.constant 0 : i32
    return %c0_i32, %c0_i32_0, %c0_i32_1 : i32, i32, i32
  }
  func.func @transform_11(%arg0: i32) -> (i32, i32, i32) {
    %c0_i32 = arith.constant 0 : i32
    %c0_i32_0 = arith.constant 0 : i32
    %c0_i32_1 = arith.constant 0 : i32
    %c0_i32_2 = arith.constant 0 : i32
    return %c0_i32, %c0_i32_0, %c0_i32_1 : i32, i32, i32
  }
  func.func @transform_12(%arg0: i32) -> (i32, i32, i32) {
    %c0_i32 = arith.constant 0 : i32
    %c0_i32_0 = arith.constant 0 : i32
    %c0_i32_1 = arith.constant 0 : i32
    %c0_i32_2 = arith.constant 0 : i32
    return %c0_i32, %c0_i32_0, %c0_i32_1 : i32, i32, i32
  }
  func.func @transform_13(%arg0: i32) -> (i32, i32, i32) {
    %c0_i32 = arith.constant 0 : i32
    %c0_i32_0 = arith.constant 0 : i32
    %c0_i32_1 = arith.constant 0 : i32
    %c0_i32_2 = arith.constant 0 : i32
    return %c0_i32, %c0_i32_0, %c0_i32_1 : i32, i32, i32
  }
  func.func @transform_14(%arg0: i32) -> (i32, i32, i32, i32) {
    %c0_i32 = arith.constant 0 : i32
    %c0_i32_0 = arith.constant 0 : i32
    %c0_i32_1 = arith.constant 0 : i32
    %c0_i32_2 = arith.constant 0 : i32
    return %c0_i32, %arg0, %c0_i32_0, %c0_i32_1 : i32, i32, i32, i32
  }
}

</mosaic_0001>

<bundles_post_ra>
// kernel: poem_forward.4
= control target key start
LH: loop header
LB: loop body
LE: loop exit
PB: predicated region body
PF: predicated region fallthrough
CT: control target
= control target key end

     0   :  { %v221_v0 = vmov 0.0   ;;  %vm222_vm0 = vmmov 0   ;;  %vm32_vm1 = vcmask 130048   ;;  %vm189_vm2 = vcmask 5120   ;;  %s279_s1 = inlined_call_operand.vmem [shape: f32[16,16], index: 1, kind: input, shape index: {}]   ;;  %s280_s0 = inlined_call_operand.vmem [shape: f32[6,16], index: 0, kind: input, shape index: {}]   ;;  %s281_s3 = inlined_call_operand.vmem [shape: f32[16,1], index: 3, kind: input, shape index: {}]   ;;  %s282_s4 = inlined_call_operand.<no memory space> [shape: f32[1,1], index: 4, kind: input, shape index: {}]   ;;  %s283_s2 = inlined_call_operand.vmem [shape: f32[1,16], index: 2, kind: input, shape index: {}]   ;;  %s284_s5 = inlined_call_operand.vmem [shape: f32[6,1], index: 5, kind: output, shape index: {}]  }
   0x1   :  { %205 = vmatprep.subr.mxu0 %v221_v0  ;;  %v24_v1 = vld [vmem:[%s279_s1 + $0x8] sm:$0xff]  ;;  %v23_v2 = vld [vmem:[%s279_s1] sm:$0xff]  ;;  %209 = vmatprep.mubr.msk.f32.mxu0 %vm222_vm0, %v221_v0  ;;  %v10_v6 = vstv %s282_s4 }
   0x2   :  { %206 = vmatpush3.msra.mxu0 %v24_v1  ;;  %v22_v3 = vld [vmem:[%s280_s0] sm:$0x3f]  ;;  %212 = vmatprep.subr.mxu1 %v221_v0  ;;  %v108_v4 = vld [vmem:[%s281_s3 + $0x8] sm:$0xff]  ;;  %11 = vst [vmem:[#allocation2] sm:$0x1] %v10_v6 }
   0x3   :  { %207 = vmatprep.subr.mxu0 %v221_v0  ;;  %216 = vmatprep.mubr.msk.f32.mxu1 %vm222_vm0, %v221_v0  ;;  %v107_v5 = vld [vmem:[%s281_s3] sm:$0xff] }
   0x4   :  { %208 = vmatpush3.msra.mxu0 %v23_v2  ;;  %213 = vmatpush3.msra.mxu1 %v108_v4  ;;  %v195_v7 = vld [vmem:[%s283_s2] ss:$0 sm:$0xff] }
   0x5   :  { %210 = vmatmul.mubr.msk.f32.vlgmr.msra.gmra.mxu0 %vm32_vm1, %v22_v3  ;;  %214 = vmatprep.subr.mxu1 %v221_v0 }
   0x6   :  { %215 = vmatpush3.msra.mxu1 %v107_v5 }
   0x9   :  { %v197_v12 = vld [vmem:[#allocation2] ss:$0 sm:$0xff] }
  0xc5   :  { %v102_v8 = vpop.f32.mrf.mxu0 }
  0xc6   :  { %v103_v9 = vadd.f32 %v195_v7, %v102_v8 }
  0xc7   :  { %v211_v10 = vpop.f32.mrf.mxu0 }
  0xc8   :  { %v106_v11 = vmax.f32 %v103_v9, 0.0 }
  0xca   :  { %217 = vmatmul.mubr.msk.f32.vlgmr.msra.gmra.mxu1 %vm32_vm1, %v106_v11 }
 0x18a   :  { %v185_v13 = vpop.f32.mrf.mxu1 }
 0x18b   :  { %v186_v14 = vadd.f32 %v197_v12, %v185_v13 }
 0x18c   :  { %v218_v15 = vpop.f32.mrf.mxu1 }
 0x18d   :  { %190 = vst.msk [vmem:[%s284_s5] sm:$0x3f] %vm189_vm2, %v186_v14 }

// kernel: poem_forward.3
= control target key start
LH: loop header
LB: loop body
LE: loop exit
PB: predicated region body
PF: predicated region fallthrough
CT: control target
= control target key end

     0   :  { %s2031_s17 = smov 0   ;;  %s2428_s0 = inlined_call_operand.vmem [shape: f32[256,8], index: 0, kind: input, shape index: {}]   ;;  %s2429_s1 = inlined_call_operand.vmem [shape: f32[256,12], index: 1, kind: input, shape index: {}]   ;;  %s2430_s2 = inlined_call_operand.vmem [shape: f32[256,48], index: 2, kind: input, shape index: {}]   ;;  %s2431_s3 = inlined_call_operand.vmem [shape: f32[8,32], index: 3, kind: input, shape index: {}]   ;;  %s2432_s4 = inlined_call_operand.vmem [shape: f32[1,32], index: 4, kind: input, shape index: {}]   ;;  %s2433_s5 = inlined_call_operand.vmem [shape: f32[12,64], index: 5, kind: input, shape index: {}]   ;;  %s2434_s6 = inlined_call_operand.vmem [shape: f32[1,64], index: 6, kind: input, shape index: {}]   ;;  %s2435_s7 = inlined_call_operand.vmem [shape: f32[64,32], index: 7, kind: input, shape index: {}]   ;;  %s2436_s8 = inlined_call_operand.vmem [shape: f32[1,32], index: 8, kind: input, shape index: {}]   ;;  %s2437_s9 = inlined_call_operand.vmem [shape: f32[48,32], index: 9, kind: input, shape index: {}]   ;;  %s2438_s10 = inlined_call_operand.vmem [shape: f32[1,32], index: 10, kind: input, shape index: {}]   ;;  %s2439_s11 = inlined_call_operand.vmem [shape: f32[256,32], index: 11, kind: output, shape index: {}]  }
   0x1 LB: > { %s1596_s18 = sadd.s32 4294967295, %s1969_s17   ;;  %p1600_p0 = scmp.ge.s32.totalorder %s1969_s17, 1  ;;  %s1969_s17 = sphi %s2031_s17, %s21_s17  }
   0x2   : > { %p360_p1 = scmp.lt.s32.totalorder %s1969_s17, 3 }
   0x4   : > { %p361_p2 = pnand %p1600_p0, %p360_p1 }
   0x5   : > { %s1601_s23 = sshll.u32 (!%p361_p2), %s1596_s18, 4 }
   0x6   : > { %364 = sbr.rel (%p361_p2) target bundleno = 486 (0x1e6), region = 64  ;;  %p411_p3 = scmp.lt.s32.totalorder (!%p361_p2), %s1601_s23, 31 }
   0xb   : > { %v813_v0 = vld [vmem:[%s2433_s5 + $0x8] sm:$0xf]  ;;  %vm870_vm0 = vcmask 1043456   ;;  %v812_v1 = vld [vmem:[%s2433_s5] sm:$0xff]  ;;  %v2051_v3 = vld [vmem:[%s2435_s7 + $0x38] sm:$0xff]  ;;  %s2441_s23 = smov (!%p411_p3, %s1601_s23), 31 }
   0xc   : > { %1787 = vmatprep.subr.msk.mxu1 %vm870_vm0, %v813_v0  ;;  %v450_v2 = vld [vmem:[%s2431_s3] sm:$0xff]  ;;  %v2056_v4 = vld [vmem:[%s2437_s9 + $0x28] sm:$0xff]  ;;  %s2059_s30 = sshll.u32 %s2441_s23, 3  ;;  %vm458_vm1 = vcmask 64512   ;;  %v1041_v53 = vld [vmem:[%s2435_s7 + $0x30] sm:$0xff]  ;;  %vm821_vm2 = vcmask 97280  }
   0xd   : > { %1788 = vmatpush3.msk.msra.mxu1 %vm870_vm0, %v813_v0  ;;  %1761 = vmatprep.subr.mxu0 %v450_v2  ;;  %s2066_s14 = scalar_lea.vmem %s2429_s1, %s2059_s30  ;;  %s2099_s18 = scalar_lea.vmem %s2428_s0, %s2059_s30  ;;  %v1040_v62 = vld [vmem:[%s2435_s7 + $0x28] sm:$0xff]  ;;  %vm1273_vm3 = vcmask 392192   ;;  %vm1050_vm4 = vcmask 523264   ;;  %vm1499_vm5 = vcmask 261120  }
   0xe   : > { %1789 = vmatprep.subr.mxu1 %v812_v1  ;;  %1762 = vmatpush3.msra.mxu0 %v450_v2  ;;  %v652_v5 = vld [vmem:[%s2066_s14] sm:$0xff]  ;;  %v653_v6 = vld [vmem:[%s2066_s14 + $0x8] sm:$0xff]  ;;  %v654_v7 = vld [vmem:[%s2066_s14 + $0x10] sm:$0xff]  ;;  %s2244_s29 = scalar_lea.vmem %s2430_s2, %s2059_s30  ;;  %s2340_s23 = scalar_lea.vmem %s2439_s11, %s2059_s30 }
   0xf   : > { %1790 = vmatpush3.msra.mxu1 %v812_v1  ;;  %1815 = vmatprep.subr.mxu0 %v2051_v3  ;;  %v668_v8 = vmax.f32 %v652_v5, 0.0  ;;  %v669_v9 = vmax.f32 %v653_v6, 0.0  ;;  %v670_v10 = vmax.f32 %v654_v7, 0.0  ;;  %v655_v11 = vld [vmem:[%s2066_s14 + $0x18] sm:$0xff]  ;;  %v656_v12 = vld [vmem:[%s2066_s14 + $0x20] sm:$0xff]  ;;  %v657_v13 = vld [vmem:[%s2066_s14 + $0x28] sm:$0xff] }
  0x10   : > { %1855 = vmatprep.subr.mxu1 %v2056_v4  ;;  %v671_v14 = vmax.f32 %v655_v11, 0.0  ;;  %v672_v15 = vmax.f32 %v656_v12, 0.0  ;;  %v673_v16 = vmax.f32 %v657_v13, 0.0  ;;  %v658_v17 = vld [vmem:[%s2066_s14 + $0x30] sm:$0xff]  ;;  %v659_v18 = vld [vmem:[%s2066_s14 + $0x38] sm:$0xff]  ;;  %v660_v33 = vld [vmem:[%s2066_s14 + $0x40] sm:$0xff] }
  0x11   : > { %v2076_v19 = vmin.f32 %v668_v8, 1.0  ;;  %v2078_v20 = vmin.f32 %v669_v9, 1.0  ;;  %v2080_v21 = vmin.f32 %v670_v10, 1.0  ;;  %v674_v27 = vmax.f32 %v658_v17, 0.0  ;;  %v661_v40 = vld [vmem:[%s2066_s14 + $0x48] sm:$0xff]  ;;  %v662_v41 = vld [vmem:[%s2066_s14 + $0x50] sm:$0xff] }
  0x12   : > { %v2082_v22 = vmin.f32 %v671_v14, 1.0  ;;  %v2084_v23 = vmin.f32 %v672_v15, 1.0  ;;  %v2086_v24 = vmin.f32 %v673_v16, 1.0  ;;  %v675_v28 = vmax.f32 %v659_v18, 0.0  ;;  %v663_v45 = vld [vmem:[%s2066_s14 + $0x58] sm:$0xff]  ;;  %v434_v47 = vld [vmem:[%s2099_s18] sm:$0xff] }
  0x13   : > { %v716_v25 = vsub.f32 1.0, %v2076_v19  ;;  %v717_v26 = vsub.f32 1.0, %v2078_v20  ;;  %v718_v29 = vsub.f32 1.0, %v2080_v21  ;;  %v2101_v38 = vmin.f32 %v674_v27, 1.0  ;;  %1763 = vmatprep.mubr.msk.f32.mxu0 %vm458_vm1, %v434_v47  ;;  %v435_v51 = vld [vmem:[%s2099_s18 + $0x8] sm:$0xff]  ;;  %v436_v52 = vld [vmem:[%s2099_s18 + $0x10] sm:$0xff] }
  0x14   : > { %v719_v30 = vsub.f32 1.0, %v2082_v22  ;;  %v720_v36 = vsub.f32 1.0, %v2084_v23  ;;  %v721_v37 = vsub.f32 1.0, %v2086_v24  ;;  %v2103_v39 = vmin.f32 %v675_v28, 1.0  ;;  %v664_v57 = vld [vmem:[%s2066_s14 + $0x60] sm:$0xff]  ;;  %1764 = vmatmul.mubr.msk.f32.vlgmr.msra.gmra.mxu0 %vm458_vm1, %v435_v51  ;;  %v665_v60 = vld [vmem:[%s2066_s14 + $0x68] sm:$0xff] }
  0x15   : > { %v732_v31 = vmax.f32 %v716_v25, 1e-05  ;;  %v733_v32 = vmax.f32 %v717_v26, 1e-05  ;;  %v734_v34 = vmax.f32 %v718_v29, 1e-05  ;;  %1816 = vmatpush3.msra.mxu0 %v2051_v3  ;;  %1766 = vmatprep.mubr.msk.f32.mxu0 %vm458_vm1, %v436_v52 }
  0x16   : > { %v735_v35 = vmax.f32 %v719_v30, 1e-05  ;;  %v736_v42 = vmax.f32 %v720_v36, 1e-05  ;;  %v737_v43 = vmax.f32 %v721_v37, 1e-05  ;;  %1817 = vmatprep.subr.mxu0 %v1041_v53 }
  0x17   : > { %1899 = vrcp.f32 %v732_v31  ;;  %v676_v44 = vmax.f32 %v660_v33, 0.0  ;;  %v722_v46 = vsub.f32 1.0, %v2101_v38  ;;  %v723_v48 = vsub.f32 1.0, %v2103_v39  ;;  %v437_v61 = vld [vmem:[%s2099_s18 + $0x18] sm:$0xff]  ;;  %v438_v2 = vld [vmem:[%s2099_s18 + $0x20] sm:$0xff]  ;;  %v666_v6 = vld [vmem:[%s2066_s14 + $0x70] sm:$0xff]  ;;  %1818 = vmatpush3.msra.mxu0 %v1041_v53 }
  0x18   : > { %1901 = vrcp.f32 %v733_v32  ;;  %v677_v50 = vmax.f32 %v661_v40, 0.0  ;;  %v678_v55 = vmax.f32 %v662_v41, 0.0  ;;  %v679_v56 = vmax.f32 %v663_v45, 0.0  ;;  %v1039_v7 = vld [vmem:[%s2435_s7 + $0x20] sm:$0xff]  ;;  %v667_v11 = vld [vmem:[%s2066_s14 + $0x78] sm:$0xff]  ;;  %1767 = vmatmul.mubr.msk.f32.gmra.mxu0 %vm458_vm1, %v437_v61  ;;  %1819 = vmatprep.subr.mxu0 %v1040_v62  ;;  %v439_v16 = vld [vmem:[%s2099_s18 + $0x28] sm:$0xff] }
  0x19   : > { %1903 = vrcp.f32 %v734_v34  ;;  %v2111_v49 = vmin.f32 %v676_v44, 1.0  ;;  %v738_v54 = vmax.f32 %v722_v46, 1e-05  ;;  %v739_v58 = vmax.f32 %v723_v48, 1e-05  ;;  %v1038_v12 = vld [vmem:[%s2435_s7 + $0x18] sm:$0xff]  ;;  %1769 = vmatprep.mubr.msk.f32.mxu0 %vm458_vm1, %v438_v2  ;;  %1820 = vmatpush3.msra.mxu0 %v1040_v62 }
  0x1a   : > { %1905 = vrcp.f32 %v735_v35  ;;  %v2129_v63 = vmin.f32 %v677_v50, 1.0  ;;  %v2131_v0 = vmin.f32 %v678_v55, 1.0  ;;  %v2133_v1 = vmin.f32 %v679_v56, 1.0  ;;  %v1037_v17 = vld [vmem:[%s2435_s7 + $0x10] sm:$0xff]  ;;  %1821 = vmatprep.subr.mxu0 %v1039_v7  ;;  %v443_v52 = vld [vmem:[%s2099_s18 + $0x48] sm:$0xff]  ;;  %v445_v2 = vld [vmem:[%s2099_s18 + $0x58] sm:$0xff] }
  0x1b   : > { %1907 = vrcp.f32 %v736_v42  ;;  %v724_v59 = vsub.f32 1.0, %v2111_v49  ;;  %v680_v3 = vmax.f32 %v664_v57, 0.0  ;;  %v681_v10 = vmax.f32 %v665_v60, 0.0  ;;  %v440_v27 = vld [vmem:[%s2099_s18 + $0x30] sm:$0xff]  ;;  %1822 = vmatpush3.msra.mxu0 %v1039_v7  ;;  %v442_v42 = vld [vmem:[%s2099_s18 + $0x40] sm:$0xff] }
  0x1c   : > { %1909 = vrcp.f32 %v737_v43  ;;  %v725_v8 = vsub.f32 1.0, %v2129_v63  ;;  %v726_v9 = vsub.f32 1.0, %v2131_v0  ;;  %v700_v13 = vmax.f32 %v2076_v19, 1e-05  ;;  %1770 = vmatmul.mubr.msk.f32.gmra.mxu0 %vm458_vm1, %v439_v16  ;;  %1823 = vmatprep.subr.mxu0 %v1038_v12  ;;  %v444_v55 = vld [vmem:[%s2099_s18 + $0x50] sm:$0xff] }
  0x1d   : > { %1911 = vrcp.f32 %v738_v54  ;;  %v740_v5 = vmax.f32 %v724_v59, 1e-05  ;;  %v727_v14 = vsub.f32 1.0, %v2133_v1  ;;  %v2149_v15 = vmin.f32 %v680_v3, 1.0  ;;  %1772 = vmatprep.mubr.msk.f32.mxu0 %vm458_vm1, %v440_v27  ;;  %1824 = vmatpush3.msra.mxu0 %v1038_v12  ;;  %v447_v12 = vld [vmem:[%s2099_s18 + $0x68] sm:$0xff] }
  0x1e   : > { %1913 = vrcp.f32 %v739_v58  ;;  %v741_v18 = vmax.f32 %v725_v8, 1e-05  ;;  %v742_v25 = vmax.f32 %v726_v9, 1e-05  ;;  %v682_v26 = vmax.f32 %v666_v6, 0.0  ;;  %1825 = vmatprep.subr.mxu0 %v1037_v17 }
  0x1f   : > { %1915 = vrcp.f32 %v740_v5  ;;  %v701_v19 = vmax.f32 %v2078_v20, 1e-05  ;;  %v743_v28 = vmax.f32 %v727_v14, 1e-05  ;;  %v728_v29 = vsub.f32 1.0, %v2149_v15  ;;  %v441_v20 = vld [vmem:[%s2099_s18 + $0x38] sm:$0xff]  ;;  %1826 = vmatpush3.msra.mxu0 %v1037_v17 }
  0x20   : > { %v683_v30 = vmax.f32 %v667_v11, 0.0  ;;  %v702_v31 = vmax.f32 %v2080_v21, 1e-05  ;;  %1917 = vrcp.f32 %v741_v18  ;;  %v2160_v32 = vmin.f32 %v681_v10, 1.0  ;;  %v1036_v21 = vld [vmem:[%s2435_s7 + $0x8] sm:$0xff]  ;;  %1773 = vmatmul.mubr.msk.f32.gmra.mxu0 %vm458_vm1, %v441_v20 }
  0x21   : > { %v703_v34 = vmax.f32 %v2082_v22, 1e-05  ;;  %1919 = vrcp.f32 %v742_v25  ;;  %v744_v35 = vmax.f32 %v728_v29, 1e-05  ;;  %v704_v40 = vmax.f32 %v2084_v23, 1e-05  ;;  %1827 = vmatprep.subr.mxu0 %v1036_v21  ;;  %1775 = vmatprep.mubr.msk.f32.mxu0 %vm458_vm1, %v442_v42 }
  0x22   : > { %1921 = vrcp.f32 %v743_v28  ;;  %v2170_v41 = vmin.f32 %v682_v26, 1.0  ;;  %v705_v44 = vmax.f32 %v2086_v24, 1e-05  ;;  %v2174_v45 = vmin.f32 %v683_v30, 1.0  ;;  %1828 = vmatpush3.msra.mxu0 %v1036_v21  ;;  %v1264_v30 = vld [vmem:[%s2437_s9 + $0x20] sm:$0xff]  ;;  %v1263_v21 = vld [vmem:[%s2437_s9 + $0x18] sm:$0xff] }
  0x23   : > { %1923 = vrcp.f32 %v744_v35  ;;  %v706_v23 = vmax.f32 %v2101_v38, 1e-05  ;;  %v729_v48 = vsub.f32 1.0, %v2160_v32  ;;  %v707_v24 = vmax.f32 %v2103_v39, 1e-05  ;;  %v1262_v42 = vld [vmem:[%s2437_s9 + $0x10] sm:$0xff] }
  0x24   : > { %v1900_v33 = vpop.eup %1899  ;;  %v730_v38 = vsub.f32 1.0, %v2170_v41  ;;  %v708_v58 = vmax.f32 %v2111_v49, 1e-05  ;;  %v731_v59 = vsub.f32 1.0, %v2174_v45  ;;  %1776 = vmatmul.mubr.msk.f32.gmra.mxu0 %vm458_vm1, %v443_v52  ;;  %v709_v3 = vmax.f32 %v2129_v63, 1e-05 }
  0x25   : > { %v1902_v36 = vpop.eup %1901  ;;  %v749_v37 = vmul.f32 %v1900_v33, %v700_v13  ;;  %v745_v61 = vmax.f32 %v729_v48, 1e-05  ;;  %1778 = vmatprep.mubr.msk.f32.mxu0 %vm458_vm1, %v444_v55  ;;  %v446_v49 = vld [vmem:[%s2099_s18 + $0x60] sm:$0xff]  ;;  %v710_v8 = vmax.f32 %v2131_v0, 1e-05 }
  0x26   : > { %v1904_v22 = vpop.eup %1903  ;;  %v751_v43 = vmul.f32 %v1902_v36, %v701_v19  ;;  %v746_v6 = vmax.f32 %v730_v38, 1e-05  ;;  %v747_v9 = vmax.f32 %v731_v59, 1e-05  ;;  %v711_v11 = vmax.f32 %v2133_v1, 1e-05 }
  0x27   : > { %v1906_v46 = vpop.eup %1905  ;;  %1925 = vlog2.f32 %v749_v37  ;;  %v753_v47 = vmul.f32 %v1904_v22, %v702_v31  ;;  %v712_v63 = vmax.f32 %v2149_v15, 1e-05  ;;  %v713_v20 = vmax.f32 %v2160_v32, 1e-05 }
  0x28   : > { %v1908_v50 = vpop.eup %1907  ;;  %1927 = vlog2.f32 %v751_v43  ;;  %v755_v51 = vmul.f32 %v1906_v46, %v703_v34  ;;  %1779 = vmatmul.mubr.msk.f32.gmra.mxu0 %vm458_vm1, %v445_v2  ;;  %v448_v2 = vld [vmem:[%s2099_s18 + $0x70] sm:$0xff] }
  0x29   : > { %v1910_v53 = vpop.eup %1909  ;;  %1929 = vlog2.f32 %v753_v47  ;;  %v757_v54 = vmul.f32 %v1908_v50, %v704_v40  ;;  %1781 = vmatprep.mubr.msk.f32.mxu0 %vm458_vm1, %v446_v49  ;;  %v714_v40 = vmax.f32 %v2170_v41, 1e-05  ;;  %v1261_v41 = vld [vmem:[%s2437_s9 + $0x8] sm:$0xff]  ;;  %v1244_v49 = vld [vmem:[%s2244_s29] sm:$0xff] }
  0x2a   : > { %v1912_v56 = vpop.eup %1911  ;;  %1931 = vlog2.f32 %v755_v51  ;;  %v759_v57 = vmul.f32 %v1910_v53, %v705_v44 }
  0x2b   : > { %v1914_v39 = vpop.eup %1913  ;;  %1933 = vlog2.f32 %v757_v54  ;;  %v761_v60 = vmul.f32 %v1912_v56, %v706_v23 }
  0x2c   : > { %1935 = vlog2.f32 %v759_v57  ;;  %v763_v62 = vmul.f32 %v1914_v39, %v707_v24  ;;  %v1916_v5 = vpop.eup %1915  ;;  %1782 = vmatmul.mubr.msk.f32.gmra.mxu0 %vm458_vm1, %v447_v12  ;;  %v1250_v12 = vld [vmem:[%s2244_s29 + $0x30] sm:$0xff] }
  0x2d   : > { %1937 = vlog2.f32 %v761_v60  ;;  %v765_v7 = vmul.f32 %v1916_v5, %v708_v58  ;;  %v1918_v10 = vpop.eup %1917  ;;  %1784 = vmatprep.mubr.msk.f32.mxu0 %vm458_vm1, %v448_v2  ;;  %v449_v5 = vld [vmem:[%s2099_s18 + $0x78] sm:$0xff] }
  0x2e   : > { %1939 = vlog2.f32 %v763_v62  ;;  %v1920_v13 = vpop.eup %1919  ;;  %v767_v14 = vmul.f32 %v1918_v10, %v709_v3  ;;  %v1035_v3 = vld [vmem:[%s2435_s7] sm:$0xff] }
  0x2f   : > { %1941 = vrcp.f32 %v745_v61  ;;  %v1922_v16 = vpop.eup %1921  ;;  %v769_v17 = vmul.f32 %v1920_v13, %v710_v8  ;;  %1829 = vmatprep.subr.mxu0 %v1035_v3  ;;  %v1246_v8 = vld [vmem:[%s2244_s29 + $0x10] sm:$0xff]  ;;  %v1248_v10 = vld [vmem:[%s2244_s29 + $0x20] sm:$0xff]  ;;  %v1251_v13 = vld [vmem:[%s2244_s29 + $0x38] sm:$0xff] }
  0x30   : > { %1943 = vlog2.f32 %v765_v7  ;;  %v1924_v0 = vpop.eup %1923  ;;  %v771_v25 = vmul.f32 %v1922_v16, %v711_v11  ;;  %1785 = vmatmul.mubr.msk.f32.gmra.mxu0 %vm458_vm1, %v449_v5  ;;  %v1245_v7 = vld [vmem:[%s2244_s29 + $0x8] sm:$0xff]  ;;  %v1254_v16 = vld [vmem:[%s2244_s29 + $0x50] sm:$0xff] }
  0x31   : > { %1945 = vrcp.f32 %v746_v6  ;;  %v773_v27 = vmul.f32 %v1924_v0, %v712_v63  ;;  %v1260_v6 = vld [vmem:[%s2437_s9] sm:$0xff]  ;;  %1830 = vmatpush3.msra.mxu0 %v1035_v3  ;;  %v1249_v11 = vld [vmem:[%s2244_s29 + $0x28] sm:$0xff] }
  0x32   : > { %1947 = vrcp.f32 %v747_v9  ;;  %v1247_v9 = vld [vmem:[%s2244_s29 + $0x18] sm:$0xff]  ;;  %v1253_v63 = vld [vmem:[%s2244_s29 + $0x48] sm:$0xff]  ;;  %v1256_v0 = vld [vmem:[%s2244_s29 + $0x60] sm:$0xff] }
  0x33   : > { %1949 = vlog2.f32 %v767_v14  ;;  %v1252_v14 = vld [vmem:[%s2244_s29 + $0x40] sm:$0xff] }
  0x34   : > { %v1926_v18 = vpop.eup %1925  ;;  %1951 = vlog2.f32 %v769_v17  ;;  %v1255_v17 = vld [vmem:[%s2244_s29 + $0x58] sm:$0xff] }
  0x35   : > { %v1928_v26 = vpop.eup %1927  ;;  %v781_v1 = vmul.f32 0.6931472, %v1926_v18  ;;  %1953 = vlog2.f32 %v771_v25  ;;  %v1257_v18 = vld [vmem:[%s2244_s29 + $0x68] sm:$0xff]  ;;  %v1258_v25 = vld [vmem:[%s2244_s29 + $0x70] sm:$0xff] }
  0x36   : > { %v1930_v19 = vpop.eup %1929  ;;  %v783_v28 = vmul.f32 0.6931472, %v1928_v26  ;;  %1955 = vlog2.f32 %v773_v27  ;;  %v1259_v26 = vld [vmem:[%s2244_s29 + $0x78] sm:$0xff] }
  0x37   : > { %v1932_v29 = vpop.eup %1931  ;;  %1791 = vmatprep.mubr.msk.f32.mxu1 %vm821_vm2, %v781_v1  ;;  %v785_v15 = vmul.f32 0.6931472, %v1930_v19  ;;  %v1626_v1 = vld [vmem:[%s2434_s6] ss:$0 sm:$0xff] }
  0x38   : > { %v1934_v31 = vpop.eup %1933  ;;  %1792 = vmatmul.mubr.msk.f32.vlgmr.msra.gmra.mxu1 %vm821_vm2, %v783_v28  ;;  %v787_v33 = vmul.f32 0.6931472, %v1932_v29 }
  0x39   : > { %v1936_v34 = vpop.eup %1935  ;;  %1794 = vmatprep.mubr.msk.f32.mxu1 %vm821_vm2, %v785_v15  ;;  %v789_v35 = vmul.f32 0.6931472, %v1934_v31  ;;  %1856 = vmatpush3.msra.mxu1 %v2056_v4  ;;  %v715_v4 = vmax.f32 %v2174_v45, 1e-05 }
  0x3a   : > { %v1938_v36 = vpop.eup %1937  ;;  %1857 = vmatprep.subr.mxu1 %v1264_v30  ;;  %v791_v32 = vmul.f32 0.6931472, %v1936_v34 }
  0x3b   : > { %v1940_v37 = vpop.eup %1939  ;;  %1858 = vmatpush3.msra.mxu1 %v1264_v30  ;;  %v793_v44 = vmul.f32 0.6931472, %v1938_v36 }
  0x3c   : > { %v1942_v22 = vpop.eup %1941  ;;  %1795 = vmatmul.mubr.msk.f32.gmra.mxu1 %vm821_vm2, %v787_v33  ;;  %1859 = vmatprep.subr.mxu1 %v1263_v21  ;;  %v795_v45 = vmul.f32 0.6931472, %v1940_v37 }
  0x3d   : > { %v1944_v43 = vpop.eup %1943  ;;  %1797 = vmatprep.mubr.msk.f32.mxu1 %vm821_vm2, %v789_v35  ;;  %v775_v46 = vmul.f32 %v1942_v22, %v713_v20  ;;  %1860 = vmatpush3.msra.mxu1 %v1263_v21 }
  0x3e   : > { %v1946_v47 = vpop.eup %1945  ;;  %1861 = vmatprep.subr.mxu1 %v1262_v42  ;;  %v797_v24 = vmul.f32 0.6931472, %v1944_v43 }
  0x3f   : > { %v1948_v23 = vpop.eup %1947  ;;  %1957 = vlog2.f32 %v775_v46  ;;  %v777_v48 = vmul.f32 %v1946_v47, %v714_v40  ;;  %1862 = vmatpush3.msra.mxu1 %v1262_v42 }
  0x40   : > { %1798 = vmatmul.mubr.msk.f32.gmra.mxu1 %vm821_vm2, %v791_v32  ;;  %v779_v50 = vmul.f32 %v1948_v23, %v715_v4  ;;  %1863 = vmatprep.subr.mxu1 %v1261_v41  ;;  %v1950_v51 = vpop.eup %1949 }
  0x41   : > { %1800 = vmatprep.mubr.msk.f32.mxu1 %vm821_vm2, %v793_v44  ;;  %1959 = vlog2.f32 %v777_v48  ;;  %1864 = vmatpush3.msra.mxu1 %v1261_v41  ;;  %v1952_v52 = vpop.eup %1951  ;;  %v799_v53 = vmul.f32 0.6931472, %v1950_v51 }
  0x42   : > { %1961 = vlog2.f32 %v779_v50  ;;  %v1954_v54 = vpop.eup %1953  ;;  %v801_v38 = vmul.f32 0.6931472, %v1952_v52  ;;  %1865 = vmatprep.subr.mxu1 %v1260_v6 }
  0x43   : > { %v1956_v55 = vpop.eup %1955  ;;  %v803_v56 = vmul.f32 0.6931472, %v1954_v54  ;;  %1866 = vmatpush3.msra.mxu1 %v1260_v6 }
  0x44   : > { %1801 = vmatmul.mubr.msk.f32.gmra.mxu1 %vm821_vm2, %v795_v45  ;;  %v805_v57 = vmul.f32 0.6931472, %v1956_v55 }
  0x45   : > { %1803 = vmatprep.mubr.msk.f32.mxu1 %vm821_vm2, %v797_v24 }
  0x48   : > { %1804 = vmatmul.mubr.msk.f32.gmra.mxu1 %vm821_vm2, %v799_v53 }
  0x49   : > { %1806 = vmatprep.mubr.msk.f32.mxu1 %vm821_vm2, %v801_v38 }
  0x4c   : > { %v1958_v58 = vpop.eup %1957  ;;  %1807 = vmatmul.mubr.msk.f32.gmra.mxu1 %vm821_vm2, %v803_v56 }
  0x4d   : > { %1809 = vmatprep.mubr.msk.f32.mxu1 %vm821_vm2, %v805_v57  ;;  %v807_v59 = vmul.f32 0.6931472, %v1958_v58 }
  0x4e   : > { %v1960_v39 = vpop.eup %1959 }
  0x4f   : > { %v1962_v60 = vpop.eup %1961  ;;  %v809_v61 = vmul.f32 0.6931472, %v1960_v39 }
  0x50   : > { %1810 = vmatmul.mubr.msk.f32.gmra.mxu1 %vm821_vm2, %v807_v59  ;;  %v811_v62 = vmul.f32 0.6931472, %v1962_v60 }
  0x51   : > { %1812 = vmatprep.mubr.msk.f32.mxu1 %vm821_vm2, %v809_v61 }
  0x54   : > { %1813 = vmatmul.mubr.msk.f32.gmra.mxu1 %vm821_vm2, %v811_v62 }
  0x55   : > { %1867 = vmatprep.mubr.msk.f32.mxu1 %vm1273_vm3, %v1244_v49 }
  0x58   : > { %1868 = vmatmul.mubr.msk.f32.vlgmr.msra.gmra.mxu1 %vm1273_vm3, %v1245_v7 }
  0x59   : > { %1870 = vmatprep.mubr.msk.f32.mxu1 %vm1273_vm3, %v1246_v8 }
  0x5c   : > { %1871 = vmatmul.mubr.msk.f32.gmra.mxu1 %vm1273_vm3, %v1247_v9 }
  0x5d   : > { %1873 = vmatprep.mubr.msk.f32.mxu1 %vm1273_vm3, %v1248_v10 }
  0x60   : > { %1874 = vmatmul.mubr.msk.f32.gmra.mxu1 %vm1273_vm3, %v1249_v11 }
  0x61   : > { %1876 = vmatprep.mubr.msk.f32.mxu1 %vm1273_vm3, %v1250_v12 }
  0x64   : > { %1877 = vmatmul.mubr.msk.f32.gmra.mxu1 %vm1273_vm3, %v1251_v13 }
  0x65   : > { %1879 = vmatprep.mubr.msk.f32.mxu1 %vm1273_vm3, %v1252_v14 }
  0x68   : > { %1880 = vmatmul.mubr.msk.f32.gmra.mxu1 %vm1273_vm3, %v1253_v63 }
  0x69   : > { %1882 = vmatprep.mubr.msk.f32.mxu1 %vm1273_vm3, %v1254_v16 }
  0x6c   : > { %1883 = vmatmul.mubr.msk.f32.gmra.mxu1 %vm1273_vm3, %v1255_v17 }
  0x6d   : > { %1885 = vmatprep.mubr.msk.f32.mxu1 %vm1273_vm3, %v1256_v0 }
  0x70   : > { %1886 = vmatmul.mubr.msk.f32.gmra.mxu1 %vm1273_vm3, %v1257_v18 }
  0x71   : > { %1888 = vmatprep.mubr.msk.f32.mxu1 %vm1273_vm3, %v1258_v25 }
  0x74   : > { %1889 = vmatmul.mubr.msk.f32.gmra.mxu1 %vm1273_vm3, %v1259_v26 }
  0xd4   : > { %v1765_v7 = vpop.f32.mrf.mxu0 }
  0xd6   : > { %v573_v8 = vpop.f32.mrf.mxu0 }
  0xd8   : > { %v1768_v9 = vpop.f32.mrf.mxu0 }
  0xda   : > { %v583_v10 = vpop.f32.mrf.mxu0 }
  0xdc   : > { %v1771_v11 = vpop.f32.mrf.mxu0 }
  0xde   : > { %v593_v12 = vpop.f32.mrf.mxu0 }
  0xe0   : > { %v1774_v13 = vpop.f32.mrf.mxu0 }
  0xe2   : > { %v2297_v14 = vpop.f32.mrf.mxu0 }
  0xe4   : > { %v2299_v63 = vpop.f32.mrf.mxu0 }
  0xe6   : > { %v2301_v17 = vpop.f32.mrf.mxu0 }
  0xe8   : > { %v2303_v18 = vpop.f32.mrf.mxu0 }
  0xea   : > { %v2305_v26 = vpop.f32.mrf.mxu0 }
  0xf8   : > { %v1793_v27 = vpop.f32.mrf.mxu1 }
  0xf9   : > { %v946_v19 = vadd.f32 %v1793_v27, %v1626_v1  ;;  %v2307_v27 = vpop.f32.mrf.mxu0 }
  0xfa   : > { %v940_v28 = vpop.f32.mrf.mxu1 }
  0xfb   : > { %v941_v29 = vadd.f32 %v1626_v1, %v940_v28  ;;  %v1020_v31 = vmax.f32 %v946_v19, 0.0  ;;  %v2309_v28 = vpop.f32.mrf.mxu0 }
  0xfc   : > { %v1796_v15 = vpop.f32.mrf.mxu1 }
  0xfd   : > { %v1019_v30 = vmax.f32 %v941_v29, 0.0  ;;  %v956_v33 = vadd.f32 %v1796_v15, %v1626_v1  ;;  %v2311_v15 = vpop.f32.mrf.mxu0 }
  0xfe   : > { %v950_v34 = vpop.f32.mrf.mxu1 }
  0xff   : > { %v951_v35 = vadd.f32 %v1626_v1, %v950_v34  ;;  %1831 = vmatprep.mubr.msk.f32.mxu0 %vm1050_vm4, %v1019_v30  ;;  %v1022_v36 = vmax.f32 %v956_v33, 0.0  ;;  %v2318_v33 = vpop.f32.mrf.mxu0  ;;  %v2323_v34 = vld [vmem:[%s2436_s8] ss:$0 sm:$0xff] }
 0x100   : > { %v1799_v20 = vpop.f32.mrf.mxu1  ;;  %1832 = vmatmul.mubr.msk.f32.vlgmr.msra.gmra.mxu0 %vm1050_vm4, %v1020_v31  ;;  %v2316_v31 = vld [vmem:[%s2432_s4] ss:$0 sm:$0xff] }
 0x101   : > { %v1021_v21 = vmax.f32 %v951_v35, 0.0  ;;  %v966_v37 = vadd.f32 %v1799_v20, %v1626_v1  ;;  %v2328_v35 = vld [vmem:[%s2438_s10] ss:$0 sm:$0xff] }
 0x102   : > { %v960_v40 = vpop.f32.mrf.mxu1 }
 0x103   : > { %v961_v42 = vadd.f32 %v1626_v1, %v960_v40  ;;  %1834 = vmatprep.mubr.msk.f32.mxu0 %vm1050_vm4, %v1021_v21  ;;  %v1024_v4 = vmax.f32 %v966_v37, 0.0 }
 0x104   : > { %v1802_v22 = vpop.f32.mrf.mxu1  ;;  %1835 = vmatmul.mubr.msk.f32.gmra.mxu0 %vm1050_vm4, %v1022_v36  ;;  %v579_v36 = vadd.f32 %v1765_v7, %v2316_v31 }
 0x105   : > { %v1023_v32 = vmax.f32 %v961_v42, 0.0  ;;  %v976_v43 = vadd.f32 %v1802_v22, %v1626_v1 }
 0x106   : > { %v970_v44 = vpop.f32.mrf.mxu1 }
 0x107   : > { %v971_v46 = vadd.f32 %v1626_v1, %v970_v44  ;;  %1837 = vmatprep.mubr.msk.f32.mxu0 %vm1050_vm4, %v1023_v32  ;;  %v1026_v23 = vmax.f32 %v976_v43, 0.0  ;;  %v574_v32 = vadd.f32 %v2316_v31, %v573_v8  ;;  %v589_v44 = vadd.f32 %v1768_v9, %v2316_v31 }
 0x108   : > { %v1805_v41 = vpop.f32.mrf.mxu1  ;;  %1838 = vmatmul.mubr.msk.f32.gmra.mxu0 %vm1050_vm4, %v1024_v4 }
 0x109   : > { %v1025_v47 = vmax.f32 %v971_v46, 0.0  ;;  %v986_v48 = vadd.f32 %v1805_v41, %v1626_v1 }
 0x10a   : > { %v980_v45 = vpop.f32.mrf.mxu1 }
 0x10b   : > { %v981_v50 = vadd.f32 %v1626_v1, %v980_v45  ;;  %1840 = vmatprep.mubr.msk.f32.mxu0 %vm1050_vm4, %v1025_v47  ;;  %v1028_v52 = vmax.f32 %v986_v48, 0.0 }
 0x10c   : > { %v1808_v51 = vpop.f32.mrf.mxu1  ;;  %1841 = vmatmul.mubr.msk.f32.gmra.mxu0 %vm1050_vm4, %v1026_v23 }
 0x10d   : > { %v1027_v24 = vmax.f32 %v981_v50, 0.0  ;;  %v996_v53 = vadd.f32 %v1808_v51, %v1626_v1 }
 0x10e   : > { %v990_v54 = vpop.f32.mrf.mxu1 }
 0x10f   : > { %v991_v38 = vadd.f32 %v1626_v1, %v990_v54  ;;  %1843 = vmatprep.mubr.msk.f32.mxu0 %vm1050_vm4, %v1027_v24  ;;  %v1030_v57 = vmax.f32 %v996_v53, 0.0  ;;  %v584_v24 = vadd.f32 %v2316_v31, %v583_v10 }
 0x110   : > { %v1811_v55 = vpop.f32.mrf.mxu1  ;;  %1844 = vmatmul.mubr.msk.f32.gmra.mxu0 %vm1050_vm4, %v1028_v52 }
 0x111   : > { %v1029_v56 = vmax.f32 %v991_v38, 0.0  ;;  %v1006_v58 = vadd.f32 %v1811_v55, %v1626_v1  ;;  %v599_v38 = vadd.f32 %v1771_v11, %v2316_v31 }
 0x112   : > { %v1000_v59 = vpop.f32.mrf.mxu1 }
 0x113   : > { %v1001_v39 = vadd.f32 %v1626_v1, %v1000_v59  ;;  %1846 = vmatprep.mubr.msk.f32.mxu0 %vm1050_vm4, %v1029_v56  ;;  %v1032_v62 = vmax.f32 %v1006_v58, 0.0 }
 0x114   : > { %v1814_v60 = vpop.f32.mrf.mxu1  ;;  %1847 = vmatmul.mubr.msk.f32.gmra.mxu0 %vm1050_vm4, %v1030_v57 }
 0x115   : > { %v1031_v61 = vmax.f32 %v1001_v39, 0.0  ;;  %v1016_v2 = vadd.f32 %v1814_v60, %v1626_v1 }
 0x116   : > { %v1010_v5 = vpop.f32.mrf.mxu1 }
 0x117   : > { %v1011_v3 = vadd.f32 %v1626_v1, %v1010_v5  ;;  %1849 = vmatprep.mubr.msk.f32.mxu0 %vm1050_vm4, %v1031_v61  ;;  %v1034_v49 = vmax.f32 %v1016_v2, 0.0 }
 0x118   : > { %1850 = vmatmul.mubr.msk.f32.gmra.mxu0 %vm1050_vm4, %v1032_v62  ;;  %v1869_v16 = vpop.f32.mrf.mxu1  ;;  %v594_v62 = vadd.f32 %v2316_v31, %v593_v12 }
 0x119   : > { %v1033_v6 = vmax.f32 %v1011_v3, 0.0  ;;  %v1394_v40 = vadd.f32 %v1869_v16, %v2328_v35 }
 0x11a   : > { %v1388_v0 = vpop.f32.mrf.mxu1 }
 0x11b   : > { %1852 = vmatprep.mubr.msk.f32.mxu0 %vm1050_vm4, %v1033_v6  ;;  %v1389_v46 = vadd.f32 %v2328_v35, %v1388_v0  ;;  %v609_v6 = vadd.f32 %v1774_v13, %v2316_v31  ;;  %v604_v0 = vadd.f32 %v2316_v31, %v2297_v14 }
 0x11c   : > { %1853 = vmatmul.mubr.msk.f32.gmra.mxu0 %vm1050_vm4, %v1034_v49  ;;  %v1872_v25 = vpop.f32.mrf.mxu1 }
 0x11d   : > { %v1404_v45 = vadd.f32 %v1872_v25, %v2328_v35 }
 0x11e   : > { %v1398_v1 = vpop.f32.mrf.mxu1 }
 0x11f   : > { %v1399_v55 = vadd.f32 %v2328_v35, %v1398_v1 }
 0x120   : > { %v1875_v19 = vpop.f32.mrf.mxu1 }
 0x121   : > { %v1414_v39 = vadd.f32 %v1875_v19, %v2328_v35  ;;  %v619_v19 = vadd.f32 %v2299_v63, %v2316_v31 }
 0x122   : > { %v1408_v29 = vpop.f32.mrf.mxu1 }
 0x123   : > { %v1409_v49 = vadd.f32 %v2328_v35, %v1408_v29 }
 0x124   : > { %v1878_v30 = vpop.f32.mrf.mxu1 }
 0x125   : > { %v1424_v11 = vadd.f32 %v1878_v30, %v2328_v35 }
 0x126   : > { %v1418_v20 = vpop.f32.mrf.mxu1 }
 0x127   : > { %v1419_v29 = vadd.f32 %v2328_v35, %v1418_v20 }
 0x128   : > { %v1881_v22 = vpop.f32.mrf.mxu1 }
 0x12a   : > { %v1428_v51 = vpop.f32.mrf.mxu1 }
 0x12c   : > { %v1884_v61 = vpop.f32.mrf.mxu1 }
 0x12e   : > { %v1438_v16 = vpop.f32.mrf.mxu1 }
 0x1c0   : > { %v1833_v21 = vpop.f32.mrf.mxu0 }
 0x1c1   : > { %v1171_v37 = vadd.f32 %v1833_v21, %v2323_v34 }
 0x1c2   : > { %v1165_v42 = vpop.f32.mrf.mxu0 }
 0x1c3   : > { %v1468_v4 = vadd.f32 %v1171_v37, %v579_v36  ;;  %v1166_v43 = vadd.f32 %v2323_v34, %v1165_v42  ;;  %v1434_v37 = vadd.f32 %v1881_v22, %v2328_v35  ;;  %v1887_v42 = vpop.f32.mrf.mxu1 }
 0x1c4   : > { %v1836_v41 = vpop.f32.mrf.mxu0 }
 0x1c5   : > { %v1484_v47 = vadd.f32 %v1468_v4, %v1394_v40  ;;  %v1467_v23 = vadd.f32 %v1166_v43, %v574_v32  ;;  %v1181_v48 = vadd.f32 %v1836_v41, %v2323_v34  ;;  %v614_v32 = vadd.f32 %v2316_v31, %v2301_v17 }
 0x1c6   : > { %v1175_v50 = vpop.f32.mrf.mxu0  ;;  %v629_v43 = vadd.f32 %v2303_v18, %v2316_v31 }
 0x1c7   : > { %1501 = vst.msk [vmem:[%s2340_s23 + $0x8] sm:$0xff] %vm1499_vm5, %v1484_v47  ;;  %v1483_v52 = vadd.f32 %v1467_v23, %v1389_v46  ;;  %v1470_v53 = vadd.f32 %v1181_v48, %v589_v44  ;;  %v1176_v54 = vadd.f32 %v2323_v34, %v1175_v50  ;;  %v1429_v44 = vadd.f32 %v2328_v35, %v1428_v51  ;;  %v1448_v48 = vpop.f32.mrf.mxu1 }
 0x1c8   : > { %v1839_v56 = vpop.f32.mrf.mxu0  ;;  %v1444_v47 = vadd.f32 %v1884_v61, %v2328_v35  ;;  %v1449_v61 = vadd.f32 %v2328_v35, %v1448_v48 }
 0x1c9   : > { %1500 = vst.msk [vmem:[%s2340_s23] sm:$0xff] %vm1499_vm5, %v1483_v52  ;;  %v1486_v57 = vadd.f32 %v1470_v53, %v1404_v45  ;;  %v1469_v58 = vadd.f32 %v1176_v54, %v584_v24  ;;  %v1191_v59 = vadd.f32 %v1839_v56, %v2323_v34  ;;  %v624_v45 = vadd.f32 %v2316_v31, %v2305_v26 }
 0x1ca   : > { %v1185_v60 = vpop.f32.mrf.mxu0  ;;  %v639_v24 = vadd.f32 %v2307_v27, %v2316_v31  ;;  %v1439_v52 = vadd.f32 %v2328_v35, %v1438_v16 }
 0x1cb   : > { %1503 = vst.msk [vmem:[%s2340_s23 + $0x18] sm:$0xff] %vm1499_vm5, %v1486_v57  ;;  %v1485_v2 = vadd.f32 %v1469_v58, %v1399_v55  ;;  %v1472_v5 = vadd.f32 %v1191_v59, %v599_v38  ;;  %v1186_v3 = vadd.f32 %v2323_v34, %v1185_v60  ;;  %v1454_v55 = vadd.f32 %v1887_v42, %v2328_v35  ;;  %v1890_v57 = vpop.f32.mrf.mxu1 }
 0x1cc   : > { %v1842_v7 = vpop.f32.mrf.mxu0  ;;  %v634_v58 = vadd.f32 %v2316_v31, %v2309_v28  ;;  %v649_v60 = vadd.f32 %v2311_v15, %v2316_v31 }
 0x1cd   : > { %1502 = vst.msk [vmem:[%s2340_s23 + $0x10] sm:$0xff] %vm1499_vm5, %v1485_v2  ;;  %v1488_v8 = vadd.f32 %v1472_v5, %v1414_v39  ;;  %v1471_v9 = vadd.f32 %v1186_v3, %v594_v62  ;;  %v1201_v10 = vadd.f32 %v1842_v7, %v2323_v34  ;;  %v1464_v3 = vadd.f32 %v1890_v57, %v2328_v35 }
 0x1ce   : > { %v1195_v12 = vpop.f32.mrf.mxu0  ;;  %v644_v7 = vadd.f32 %v2316_v31, %v2318_v33 }
 0x1cf   : > { %1505 = vst.msk [vmem:[%s2340_s23 + $0x28] sm:$0xff] %vm1499_vm5, %v1488_v8  ;;  %v1487_v13 = vadd.f32 %v1471_v9, %v1409_v49  ;;  %v1474_v25 = vadd.f32 %v1201_v10, %v609_v6  ;;  %v1196_v1 = vadd.f32 %v2323_v34, %v1195_v12  ;;  %v1458_v49 = vpop.f32.mrf.mxu1 }
 0x1d0   : > { %v1845_v21 = vpop.f32.mrf.mxu0  ;;  %v1459_v12 = vadd.f32 %v2328_v35, %v1458_v49 }
 0x1d1   : > { %1504 = vst.msk [vmem:[%s2340_s23 + $0x20] sm:$0xff] %vm1499_vm5, %v1487_v13  ;;  %v1490_v30 = vadd.f32 %v1474_v25, %v1424_v11  ;;  %v1473_v36 = vadd.f32 %v1196_v1, %v604_v0  ;;  %v1211_v14 = vadd.f32 %v1845_v21, %v2323_v34 }
 0x1d2   : > { %v1205_v40 = vpop.f32.mrf.mxu0 }
 0x1d3   : > { %1507 = vst.msk [vmem:[%s2340_s23 + $0x38] sm:$0xff] %vm1499_vm5, %v1490_v30  ;;  %v1489_v63 = vadd.f32 %v1473_v36, %v1419_v29  ;;  %v1476_v20 = vadd.f32 %v1211_v14, %v619_v19  ;;  %v1206_v4 = vadd.f32 %v2323_v34, %v1205_v40 }
 0x1d4   : > { %v1848_v46 = vpop.f32.mrf.mxu0 }
 0x1d5   : > { %1506 = vst.msk [vmem:[%s2340_s23 + $0x30] sm:$0xff] %vm1499_vm5, %v1489_v63  ;;  %v1492_v22 = vadd.f32 %v1476_v20, %v1434_v37  ;;  %v1475_v41 = vadd.f32 %v1206_v4, %v614_v32  ;;  %v1221_v17 = vadd.f32 %v1848_v46, %v2323_v34 }
 0x1d6   : > { %v1215_v23 = vpop.f32.mrf.mxu0 }
 0x1d7   : > { %1509 = vst.msk [vmem:[%s2340_s23 + $0x48] sm:$0xff] %vm1499_vm5, %v1492_v22  ;;  %v1491_v18 = vadd.f32 %v1475_v41, %v1429_v44  ;;  %v1478_v50 = vadd.f32 %v1221_v17, %v629_v43  ;;  %v1216_v51 = vadd.f32 %v2323_v34, %v1215_v23 }
 0x1d8   : > { %v1851_v53 = vpop.f32.mrf.mxu0 }
 0x1d9   : > { %1508 = vst.msk [vmem:[%s2340_s23 + $0x40] sm:$0xff] %vm1499_vm5, %v1491_v18  ;;  %v1494_v54 = vadd.f32 %v1478_v50, %v1444_v47  ;;  %v1477_v38 = vadd.f32 %v1216_v51, %v624_v45  ;;  %v1231_v26 = vadd.f32 %v1851_v53, %v2323_v34 }
 0x1da   : > { %v1225_v56 = vpop.f32.mrf.mxu0 }
 0x1db   : > { %1511 = vst.msk [vmem:[%s2340_s23 + $0x58] sm:$0xff] %vm1499_vm5, %v1494_v54  ;;  %v1493_v27 = vadd.f32 %v1477_v38, %v1439_v52  ;;  %v1480_v59 = vadd.f32 %v1231_v26, %v639_v24  ;;  %v1226_v39 = vadd.f32 %v2323_v34, %v1225_v56 }
 0x1dc   : > { %v1854_v62 = vpop.f32.mrf.mxu0 }
 0x1dd   : > { %1510 = vst.msk [vmem:[%s2340_s23 + $0x50] sm:$0xff] %vm1499_vm5, %v1493_v27  ;;  %v1496_v2 = vadd.f32 %v1480_v59, %v1454_v55  ;;  %v1479_v5 = vadd.f32 %v1226_v39, %v634_v58  ;;  %v1241_v28 = vadd.f32 %v1854_v62, %v2323_v34 }
 0x1de   : > { %v1235_v6 = vpop.f32.mrf.mxu0 }
 0x1df   : > { %1513 = vst.msk [vmem:[%s2340_s23 + $0x68] sm:$0xff] %vm1499_vm5, %v1496_v2  ;;  %v1495_v15 = vadd.f32 %v1479_v5, %v1449_v61  ;;  %v1482_v8 = vadd.f32 %v1241_v28, %v649_v60  ;;  %v1236_v9 = vadd.f32 %v2323_v34, %v1235_v6 }
 0x1e1   : > { %1512 = vst.msk [vmem:[%s2340_s23 + $0x60] sm:$0xff] %vm1499_vm5, %v1495_v15  ;;  %v1498_v10 = vadd.f32 %v1482_v8, %v1464_v3  ;;  %v1481_v11 = vadd.f32 %v1236_v9, %v644_v7 }
 0x1e3   : > { %1515 = vst.msk [vmem:[%s2340_s23 + $0x78] sm:$0xff] %vm1499_vm5, %v1498_v10  ;;  %v1497_v16 = vadd.f32 %v1481_v11, %v1459_v12 }
 0x1e5   : > { %1514 = vst.msk [vmem:[%s2340_s23 + $0x70] sm:$0xff] %vm1499_vm5, %v1497_v16 }
 0x1e6 PF: > { %s21_s17 = sadd.s32 1, %s1969_s17  }
 0x1e7   : > { %p18_p4 = scmp.ge.s32.totalorder %s21_s17, 4  }
 0x1e9   :  { %20 = sbr.rel (!%p18_p4) target bundleno = 1 (0x1), region = 100 }

// kernel: poem_forward.5
= control target key start
LH: loop header
LB: loop body
LE: loop exit
PB: predicated region body
PF: predicated region fallthrough
CT: control target
= control target key end

     0   :  { %s2448_s29 = smov 0   ;;  %s2450_s30 = smov 0   ;;  %s2846_s0 = inlined_call_operand.vmem [shape: f32[2,16,54], index: 0, kind: input, shape index: {}]   ;;  %s2847_s1 = inlined_call_operand.vmem [shape: f32[2,64,8], index: 1, kind: input, shape index: {}]   ;;  %s2848_s2 = inlined_call_operand.vmem [shape: f32[2,3,64], index: 2, kind: input, shape index: {}]   ;;  %s2849_s3 = inlined_call_operand.vmem [shape: f32[2,16,3], index: 3, kind: input, shape index: {}]   ;;  %s2850_s4 = inlined_call_operand.vmem [shape: f32[54,32], index: 4, kind: input, shape index: {}]   ;;  %s2851_s5 = inlined_call_operand.vmem [shape: f32[1,32], index: 5, kind: input, shape index: {}]   ;;  %s2852_s6 = inlined_call_operand.vmem [shape: f32[32,32], index: 6, kind: input, shape index: {}]   ;;  %s2853_s7 = inlined_call_operand.vmem [shape: f32[1,32], index: 7, kind: input, shape index: {}]   ;;  %s2854_s8 = inlined_call_operand.vmem [shape: f32[8,32], index: 8, kind: input, shape index: {}]   ;;  %s2855_s9 = inlined_call_operand.vmem [shape: f32[1,32], index: 9, kind: input, shape index: {}]   ;;  %s2856_s10 = inlined_call_operand.vmem [shape: f32[2,32,32], index: 10, kind: input, shape index: {}]   ;;  %s2857_s11 = inlined_call_operand.vmem [shape: f32[2,1,32], index: 11, kind: input, shape index: {}]   ;;  %s2858_s12 = inlined_call_operand.vmem [shape: f32[2,32,3], index: 12, kind: input, shape index: {}]   ;;  %s2859_s13 = inlined_call_operand.vmem [shape: f32[2,1,3], index: 13, kind: input, shape index: {}]   ;;  %s2860_s14 = inlined_call_operand.vmem [shape: f32[2,2,16,3], index: 14, kind: output, shape index: {}]  }
   0x1   :  { %s2452_s15 = smov 0  }
   0x2 LB: > { %s2461_s16 = sadd.s32 4294967295, %s2368_s15   ;;  %s2463_s17 = sadd.s32 1, %s2368_s15   ;;  %s2368_s15 = sphi %s2452_s15, %s2866_s15   ;;  %s2364_s30 = sphi %s2450_s30, %s2865_s30   ;;  %s2360_s29 = sphi %s2448_s29, %s2864_s29  }
   0x3   : > { %s342_s18 = ssub.s32 %s2368_s15, %s2463_s17  ;;  %s345_s19 = sadd.s32 1, %s2364_s30 }
   0x4   : > { %p343_p0 = scmp.eq.s32.totalorder %s342_s18, 0  ;;  %p355_p1 = scmp.ne.s32.totalorder %s2364_s30, %s2360_s29 }
   0x5   : > { %p356_p2 = scmp.eq.s32.totalorder %s2461_s16, 1  ;;  %p1941_p3 = scmp.ge.s32.totalorder %s2368_s15, 1 }
   0x6   : > { %s2471_s20 = scalar_select %p343_p0, %s2364_s30, %s345_s19  }
   0x7   : > { %p2473_p4 = por %p356_p2, %p355_p1  ;;  %p441_p5 = scmp.lt.s32.totalorder %s2368_s15, 3 }
   0x8   : > { %2861 = sst [smem:[#allocation3_spill]] %s2471_s20 }
   0x9   : > { %p442_p6 = pnand %p1941_p3, %p441_p5 }
   0xa   : > { %p500_p7 = scmp.lt.s32.totalorder (!%p442_p6), %s2461_s16, 1 }
   0xb   : > { %445 = sbr.rel (%p442_p6) target bundleno = 2345 (0x929), region = 76 }
  0x10   : > { %v527_v0 = vld [vmem:[%s2850_s4 + $0x30] sm:$0x3f]  ;;  %vm542_vm0 = vcmask 1045504   ;;  %v526_v1 = vld [vmem:[%s2850_s4 + $0x28] sm:$0xff]  ;;  %v525_v2 = vld [vmem:[%s2850_s4 + $0x20] sm:$0xff]  ;;  %s2488_s28 = scalar_select %p500_p7, %s2461_s16, 1  ;;  %v875_v56 = vlaneseq }
  0x11   : > { %2103 = vmatprep.subr.msk.mxu0 %vm542_vm0, %v527_v0  ;;  %v626_v3 = vld [vmem:[%s2852_s6 + $0x18] sm:$0xff]  ;;  %vm535_vm1 = vcmask 441344   ;;  %v523_v5 = vld [vmem:[%s2850_s4 + $0x10] sm:$0xff]  ;;  %v522_v7 = vld [vmem:[%s2850_s4 + $0x8] sm:$0xff]  ;;  %vm634_vm2 = vcmask 261120   ;;  %vm732_vm3 = vcmask 64512  }
  0x12   : > { %2104 = vmatpush3.msk.msra.mxu0 %vm542_vm0, %v527_v0  ;;  %2120 = vmatprep.subr.mxu1 %v626_v3  ;;  %v524_v4 = vld [vmem:[%s2850_s4 + $0x18] sm:$0xff]  ;;  %s2011_s23 = sshll.u32 %s2488_s28, 4  ;;  %v521_v8 = vld [vmem:[%s2850_s4] sm:$0xff]  ;;  %v625_v10 = vld [vmem:[%s2852_s6 + $0x10] sm:$0xff]  ;;  %s2012_s25 = sshll.u32 %s2488_s28, 6  ;;  %v2370_v31 = vmov 0  }
  0x13   : > { %2105 = vmatprep.subr.mxu0 %v526_v1  ;;  %2121 = vmatpush3.msra.mxu1 %v626_v3  ;;  %s504_s26 = scalar_lea.vmem %s2846_s0, %s2011_s23  ;;  %v624_v11 = vld [vmem:[%s2852_s6 + $0x8] sm:$0xff]  ;;  %v623_v12 = vld [vmem:[%s2852_s6] sm:$0xff]  ;;  %s509_s20 = scalar_lea.vmem %s2847_s1, %s2012_s25  ;;  %v2371_v32 = vmov 1   ;;  %v2372_v33 = vmov 2   ;;  %v876_v57 = vshrl.u32 %v875_v56, 7  ;;  %vm1048_vm4 = vcmask 523264  }
  0x14   : > { %2106 = vmatpush3.msra.mxu0 %v526_v1  ;;  %v519_v6 = vld [vmem:[%s504_s26] sm:$0xff]  ;;  %v520_v9 = vld [vmem:[%s504_s26 + $0x8] sm:$0xff]  ;;  %2122 = vmatprep.subr.mxu1 %v625_v10  ;;  %v718_v23 = vld [vmem:[%s509_s20 + $0x10] sm:$0xff]  ;;  %s518_s19 = scalar_lea.vmem %s2849_s3, %s2011_s23  ;;  %s1947_s27 = sshll.u32 %s2488_s28, 2  ;;  %vm1786_vm7 = vcmask 15360   ;;  %vm1791_vm8 = vcmask 23552  }
  0x15   : > { %2107 = vmatprep.subr.mxu0 %v525_v2  ;;  %2117 = vmatprep.mubr.msk.f32.mxu0 %vm535_vm1, %v519_v6  ;;  %v724_v13 = vld [vmem:[%s2854_s8] sm:$0xff]  ;;  %v717_v22 = vld [vmem:[%s509_s20 + $0x8] sm:$0xff]  ;;  %v719_v24 = vld [vmem:[%s509_s20 + $0x18] sm:$0xff]  ;;  %s513_s18 = scalar_lea.vmem %s2848_s2, %s1947_s27  ;;  %v877_v60 = vsub.s32 0, %v876_v57  ;;  %v893_v61 = vsub.s32 1, %v876_v57  ;;  %s497_s28 = sand.u32 1, %s2360_s29  }
  0x16   : > { %2108 = vmatpush3.msra.mxu0 %v525_v2  ;;  %2123 = vmatpush3.msra.mxu1 %v625_v10  ;;  %v1950_v14 = vld [vmem:[%s2851_s5] ss:$0 sm:$0xff]  ;;  %v721_v26 = vld [vmem:[%s509_s20 + $0x28] sm:$0xff]  ;;  %v722_v27 = vld [vmem:[%s509_s20 + $0x30] sm:$0xff]  ;;  %v911_v2 = vsub.s32 2, %v876_v57  ;;  %s1942_s26 = sshll.u32 %s497_s28, 5 }
  0x17   : > { %2109 = vmatprep.subr.mxu0 %v524_v4  ;;  %2124 = vmatprep.subr.mxu1 %v624_v11  ;;  %v716_v21 = vld [vmem:[%s509_s20] sm:$0xff]  ;;  %v723_v28 = vld [vmem:[%s509_s20 + $0x38] sm:$0xff]  ;;  %v2549_v30 = vld [vmem:[%s518_s19 + $0x8] sm:$0xff]  ;;  %s2774_s29 = scalar_lea.vmem [#allocation2], %s1942_s26 }
  0x18   : > { %2110 = vmatpush3.msra.mxu0 %v524_v4  ;;  %2125 = vmatpush3.msra.mxu1 %v624_v11  ;;  %v720_v25 = vld [vmem:[%s509_s20 + $0x20] sm:$0xff]  ;;  %s2014_s20 = sshll.u32 (%p2473_p4), %s2461_s16, 4 }
  0x19   : > { %2111 = vmatprep.subr.mxu0 %v523_v5  ;;  %2126 = vmatprep.subr.mxu1 %v623_v12  ;;  %v2547_v29 = vld [vmem:[%s518_s19] sm:$0xff]  ;;  %s1805_s26 = scalar_lea.vmem (%p2473_p4), %s2860_s14, %s2014_s20 }
  0x1a   : > { %2112 = vmatpush3.msra.mxu0 %v523_v5  ;;  %2127 = vmatpush3.msra.mxu1 %v623_v12  ;;  %v1954_v35 = vld [vmem:[%s2853_s7] ss:$0 sm:$0xff] }
  0x1b   : > { %2113 = vmatprep.subr.mxu0 %v522_v7  ;;  %2131 = vmatprep.subr.mxu1 %v724_v13  ;;  %v1957_v44 = vld [vmem:[%s2855_s9] ss:$0 sm:$0xff] }
  0x1c   : > { %2114 = vmatpush3.msra.mxu0 %v522_v7  ;;  %2292 = vset.pattern.permute.xlu0 %v2370_v31  ;;  %v864_v62 = vld [vmem:[%s513_s18] sm:$0x7] }
  0x1d   : > { %2115 = vmatprep.subr.mxu0 %v521_v8  ;;  %2294 = vset.pattern.permute.xlu1 %v2370_v31  ;;  %v878_v0 = vrot.slane %v864_v62, %v877_v60  ;;  %v894_v1 = vrot.slane %v864_v62, %v893_v61  ;;  %v912_v6 = vrot.slane %v864_v62, %v911_v2  ;;  %v921_v60 = vld [vmem:[%s2856_s10 + $0x10] sm:$0xff]  ;;  %v920_v61 = vld [vmem:[%s2856_s10 + $0x8] sm:$0xff]  ;;  %v919_v62 = vld [vmem:[%s2856_s10] sm:$0xff] }
  0x1e   : > { %2116 = vmatpush3.msra.mxu0 %v521_v8  ;;  %867 = vperm.xlu0 %2292, %v2547_v29  }
  0x1f   : > { %2118 = vmatmul.mubr.msk.f32.vlgmr.msra.gmra.mxu0 %vm535_vm1, %v520_v9  ;;  %872 = vperm.xlu1 %2294, %v2549_v30  }
  0x22   : > { %2293 = vset.pattern.permute.xlu0 %v2371_v32 }
  0x23   : > { %2295 = vset.pattern.permute.xlu1 %v2371_v32  ;;  %884 = vperm.xlu0 %2293, %v2547_v29  }
  0x24   : > { %888 = vperm.xlu1 %2295, %v2549_v30  }
  0x27   : > { %2297 = vset.pattern.permute.xlu0 %v2372_v33 }
  0x28   : > { %2296 = vset.pattern.permute.xlu1 %v2372_v33  ;;  %906 = vperm.xlu0 %2297, %v2549_v30  }
  0x29   : > { %902 = vperm.xlu1 %2296, %v2547_v29  }
  0x99   : > { %v868_v58 = vpop.permute.xlu0 %867 }
  0x9a   : > { %v873_v59 = vpop.permute.xlu1 %872  ;;  %v879_v8 = vsub.f32 %v868_v58, %v878_v0 }
  0x9b   : > { %v880_v4 = vsub.f32 %v873_v59, %v878_v0 }
  0x9d   : > { %v882_v11 = vmul.f32 %v880_v4, %v880_v4  ;;  %v931_v4 = vld [vmem:[%s2858_s12 + $0x10] sm:$0xff] }
  0x9e   : > { %v885_v63 = vpop.permute.xlu0 %884 }
  0x9f   : > { %v889_v3 = vpop.permute.xlu1 %888  ;;  %v895_v9 = vsub.f32 %v885_v63, %v894_v1  ;;  %v932_v63 = vld [vmem:[%s2858_s12 + $0x18] sm:$0xff] }
  0xa0   : > { %v896_v5 = vsub.f32 %v889_v3, %v894_v1 }
  0xa2   : > { %v898_v12 = vmul.f32 %v896_v5, %v896_v5  ;;  %v1978_v5 = vld [vmem:[%s2857_s11] ss:$0 sm:$0xff] }
  0xa3   : > { %v907_v7 = vpop.permute.xlu0 %906 }
  0xa4   : > { %v903_v10 = vpop.permute.xlu1 %902 }
  0xdf   : > { %v2119_v15 = vpop.f32.mrf.mxu0 }
  0xe0   : > { %v618_v16 = vadd.f32 %v2119_v15, %v1950_v14  ;;  %v897_v15 = vmul.f32 %v895_v9, %v895_v9 }
  0xe1   : > { %v612_v17 = vpop.f32.mrf.mxu0 }
  0xe2   : > { %v613_v18 = vadd.f32 %v1950_v14, %v612_v17  ;;  %v622_v20 = vmax.f32 %v618_v16, 0.0  ;;  %v881_v14 = vmul.f32 %v879_v8, %v879_v8  ;;  %v913_v16 = vsub.f32 %v903_v10, %v912_v6 }
  0xe3   : > { %v900_v17 = vadd.f32 %v898_v12, %v882_v11 }
  0xe4   : > { %v621_v19 = vmax.f32 %v613_v18, 0.0 }
  0xe6   : > { %2128 = vmatprep.mubr.msk.f32.mxu1 %vm634_vm2, %v621_v19  ;;  %v899_v19 = vadd.f32 %v897_v15, %v881_v14 }
  0xe7   : > { %2129 = vmatmul.mubr.msk.f32.vlgmr.msra.gmra.mxu1 %vm634_vm2, %v622_v20  ;;  %v915_v20 = vmul.f32 %v913_v16, %v913_v16 }
  0xe8   : > { %2132 = vmatpush3.msra.mxu1 %v724_v13  ;;  %2133 = vmatprep.mubr.msk.f32.mxu1 %vm732_vm3, %v716_v21  ;;  %v914_v13 = vsub.f32 %v907_v7, %v912_v6 }
  0xea   : > { %v916_v18 = vmul.f32 %v914_v13, %v914_v13 }
  0xeb   : > { %2134 = vmatmul.mubr.msk.f32.vlgmr.msra.gmra.mxu1 %vm732_vm3, %v717_v22 }
  0xec   : > { %2136 = vmatprep.mubr.msk.f32.mxu1 %vm732_vm3, %v718_v23  ;;  %v2671_v22 = vadd.f32 %v916_v18, %v900_v17 }
  0xef   : > { %2137 = vmatmul.mubr.msk.f32.gmra.mxu1 %vm732_vm3, %v719_v24 }
  0xf0   : > { %2139 = vmatprep.mubr.msk.f32.mxu1 %vm732_vm3, %v720_v25  ;;  %v2673_v25 = vadd.f32 %v915_v20, %v899_v19 }
  0xf3   : > { %2140 = vmatmul.mubr.msk.f32.gmra.mxu1 %vm732_vm3, %v721_v26 }
  0xf4   : > { %2142 = vmatprep.mubr.msk.f32.mxu1 %vm732_vm3, %v722_v27 }
  0xf7   : > { %2143 = vmatmul.mubr.msk.f32.gmra.mxu1 %vm732_vm3, %v723_v28 }
 0x1a7   : > { %v2130_v34 = vpop.f32.mrf.mxu1 }
 0x1a8   : > { %v2631_v55 = vadd.f32 %v2130_v34, %v1954_v35 }
 0x1a9   : > { %v707_v36 = vpop.f32.mrf.mxu1 }
 0x1aa   : > { %v2560_v37 = vadd.f32 %v1954_v35, %v707_v36 }
 0x1ab   : > { %v2135_v38 = vpop.f32.mrf.mxu1 }
 0x1ac   : > { %2161 = vmatprep.mubr.msk.f32.mxu1 %vm634_vm2, %v2560_v37  ;;  %v2601_v53 = vadd.f32 %v2135_v38, %v1957_v44 }
 0x1ad   : > { %v823_v39 = vpop.f32.mrf.mxu1 }
 0x1ae   : > { %v2607_v54 = vadd.f32 %v1957_v44, %v823_v39 }
 0x1af   : > { %v2138_v40 = vpop.f32.mrf.mxu1 }
 0x1b0   : > { %v2589_v51 = vadd.f32 %v2138_v40, %v1957_v44 }
 0x1b1   : > { %v833_v41 = vpop.f32.mrf.mxu1 }
 0x1b2   : > { %v2595_v52 = vadd.f32 %v1957_v44, %v833_v41 }
 0x1b3   : > { %v2141_v42 = vpop.f32.mrf.mxu1 }
 0x1b4   : > { %v2577_v49 = vadd.f32 %v2141_v42, %v1957_v44 }
 0x1b5   : > { %v843_v43 = vpop.f32.mrf.mxu1 }
 0x1b6   : > { %v2583_v50 = vadd.f32 %v1957_v44, %v843_v43 }
 0x1b7   : > { %v2144_v45 = vpop.f32.mrf.mxu1 }
 0x1b8   : > { %v2567_v46 = vadd.f32 %v2144_v45, %v1957_v44 }
 0x1b9   : > { %v853_v47 = vpop.f32.mrf.mxu1 }
 0x1ba   : > { %v2569_v48 = vadd.f32 %v1957_v44, %v853_v47  ;;  %2145 = vmatprep.subr.msk.mxu1 %vm634_vm2, %v2567_v46  ;;  %2164 = vmatprep.subr.mxu0 %v2567_v46  ;;  %v922_v44 = vld [vmem:[%s2856_s10 + $0x18] sm:$0xff] }
 0x1bb   : > { %2146 = vmatpush3.xpose.msk.msra.mxu1 %vm634_vm2, %v2567_v46  ;;  %2165 = vmatpush3.msra.mxu0 %v2567_v46 }
 0x1bc   : > { %2147 = vmatprep.subr.msk.mxu1 %vm634_vm2, %v2569_v48  ;;  %2166 = vmatprep.subr.mxu0 %v2569_v48 }
 0x1bd   : > { %2167 = vmatpush3.msra.mxu0 %v2569_v48 }
 0x1be   : > { %2168 = vmatprep.subr.mxu0 %v2577_v49 }
 0x1bf   : > { %2148 = vmatpush3.xpose.msk.msra.mxu1 %vm634_vm2, %v2569_v48  ;;  %2169 = vmatpush3.msra.mxu0 %v2577_v49 }
 0x1c0   : > { %2149 = vmatprep.subr.msk.mxu1 %vm634_vm2, %v2577_v49  ;;  %2170 = vmatprep.subr.mxu0 %v2583_v50 }
 0x1c1   : > { %2171 = vmatpush3.msra.mxu0 %v2583_v50 }
 0x1c2   : > { %2172 = vmatprep.subr.mxu0 %v2589_v51 }
 0x1c3   : > { %2150 = vmatpush3.xpose.msk.msra.mxu1 %vm634_vm2, %v2577_v49  ;;  %2173 = vmatpush3.msra.mxu0 %v2589_v51 }
 0x1c4   : > { %2151 = vmatprep.subr.msk.mxu1 %vm634_vm2, %v2583_v50  ;;  %2174 = vmatprep.subr.mxu0 %v2595_v52 }
 0x1c5   : > { %2175 = vmatpush3.msra.mxu0 %v2595_v52 }
 0x1c6   : > { %2176 = vmatprep.subr.mxu0 %v2601_v53 }
 0x1c7   : > { %2152 = vmatpush3.xpose.msk.msra.mxu1 %vm634_vm2, %v2583_v50  ;;  %2177 = vmatpush3.msra.mxu0 %v2601_v53 }
 0x1c8   : > { %2153 = vmatprep.subr.msk.mxu1 %vm634_vm2, %v2589_v51  ;;  %2178 = vmatprep.subr.mxu0 %v2607_v54 }
 0x1c9   : > { %2179 = vmatpush3.msra.mxu0 %v2607_v54 }
 0x1ca   : > { %2183 = vmatprep.subr.mxu0 %v922_v44 }
 0x1cb   : > { %2154 = vmatpush3.xpose.msk.msra.mxu1 %vm634_vm2, %v2589_v51 }
 0x1cc   : > { %2155 = vmatprep.subr.msk.mxu1 %vm634_vm2, %v2595_v52 }
 0x1cf   : > { %2156 = vmatpush3.xpose.msk.msra.mxu1 %vm634_vm2, %v2595_v52 }
 0x1d0   : > { %2157 = vmatprep.subr.msk.mxu1 %vm634_vm2, %v2601_v53 }
 0x1d3   : > { %2158 = vmatpush3.xpose.msk.msra.mxu1 %vm634_vm2, %v2601_v53 }
 0x1d4   : > { %2159 = vmatprep.subr.msk.mxu1 %vm634_vm2, %v2607_v54 }
 0x1d7   : > { %2160 = vmatpush3.xpose.msk.msra.mxu1 %vm634_vm2, %v2607_v54 }
 0x1d8   : > { %2205 = vmatprep.subr.msk.mxu1 %vm634_vm2, %v2567_v46 }
 0x1da   : > { %2162 = vmatmul.mubr.msk.f32.vlgmr.msra.gmra.mxu1 %vm634_vm2, %v2631_v55 }
 0x1db   : > { %2206 = vmatpush3.xpose.msk.msra.mxu1 %vm634_vm2, %v2567_v46 }
 0x1dc   : > { %2207 = vmatprep.subr.msk.mxu1 %vm634_vm2, %v2569_v48 }
 0x1df   : > { %2208 = vmatpush3.xpose.msk.msra.mxu1 %vm634_vm2, %v2569_v48 }
 0x1e0   : > { %2209 = vmatprep.subr.msk.mxu1 %vm634_vm2, %v2577_v49 }
 0x1e3   : > { %2210 = vmatpush3.xpose.msk.msra.mxu1 %vm634_vm2, %v2577_v49 }
 0x1e4   : > { %2211 = vmatprep.subr.msk.mxu1 %vm634_vm2, %v2583_v50 }
 0x1e7   : > { %2212 = vmatpush3.xpose.msk.msra.mxu1 %vm634_vm2, %v2583_v50 }
 0x1e8   : > { %2213 = vmatprep.subr.msk.mxu1 %vm634_vm2, %v2589_v51 }
 0x1eb   : > { %2214 = vmatpush3.xpose.msk.msra.mxu1 %vm634_vm2, %v2589_v51 }
 0x1ec   : > { %2215 = vmatprep.subr.msk.mxu1 %vm634_vm2, %v2595_v52 }
 0x1ef   : > { %2216 = vmatpush3.xpose.msk.msra.mxu1 %vm634_vm2, %v2595_v52 }
 0x1f0   : > { %2217 = vmatprep.subr.msk.mxu1 %vm634_vm2, %v2601_v53 }
 0x1f3   : > { %2218 = vmatpush3.xpose.msk.msra.mxu1 %vm634_vm2, %v2601_v53 }
 0x1f4   : > { %2219 = vmatprep.subr.msk.mxu1 %vm634_vm2, %v2607_v54 }
 0x1f7   : > { %2220 = vmatpush3.xpose.msk.msra.mxu1 %vm634_vm2, %v2607_v54 }
 0x29a   : > { %v2163_v21 = vpop.f32.mrf.mxu1 }
 0x29b   : > { %v1045_v23 = vmul.f32 0.17677669, %v2163_v21  ;;  %v1331_v21 = vmax.f32 %v2549_v30, 0.0 }
 0x29c   : > { %v1035_v24 = vpop.f32.mrf.mxu1 }
 0x29d   : > { %v1044_v26 = vmul.f32 0.17677669, %v1035_v24  ;;  %v1047_v27 = vsub.f32 %v1045_v23, %v2671_v22 }
 0x29f   : > { %v1052_v28 = vsel %vm1048_vm4, %v1047_v27, -inf  ;;  %v1046_v31 = vsub.f32 %v1044_v26, %v2673_v25 }
 0x2a0   : > { %1053 = vmax.xlane.f32.xlu0 %v1052_v28 }
 0x2a1   : > { %v1049_v32 = vsel %vm1048_vm4, %v1046_v31, -inf }
 0x2a2   : > { %1050 = vmax.xlane.f32.xlu1 %v1049_v32 }
 0x329   : > { %v1054_v33 = vpop.xlane.xlu0 %1053 }
 0x32a   : > { %v1056_v34 = vsub.f32 %v1047_v27, %v1054_v33 }
 0x32b   : > { %v1051_v35 = vpop.xlane.xlu1 %1050 }
 0x32c   : > { %v1059_v36 = vmul.f32 1.442695, %v1056_v34  ;;  %v1055_v38 = vsub.f32 %v1046_v31, %v1051_v35 }
 0x32e   : > { %2298 = vpow2.f32 %v1059_v36  ;;  %v1057_v39 = vmul.f32 1.442695, %v1055_v38  ;;  %v926_v36 = vld [vmem:[%s2856_s10 + $0x38] sm:$0xff] }
 0x330   : > { %2300 = vpow2.f32 %v1057_v39 }
 0x33b   : > { %v2299_v40 = vpop.eup %2298 }
 0x33c   : > { %v1064_v41 = vsel %vm1048_vm4, %v2299_v40, 0.0 }
 0x33d   : > { %v2301_v42 = vpop.eup %2300  ;;  %1065 = vadd.xlane.f32.xlu0 %v1064_v41 }
 0x33e   : > { %v1061_v43 = vsel %vm1048_vm4, %v2301_v42, 0.0 }
 0x33f   : > { %1062 = vadd.xlane.f32.xlu1 %v1061_v43 }
 0x3c6   : > { %v1066_v45 = vpop.xlane.xlu0 %1065 }
 0x3c7   : > { %2302 = vrcp.f32 %v1066_v45 }
 0x3c8   : > { %v1063_v47 = vpop.xlane.xlu1 %1062 }
 0x3c9   : > { %2304 = vrcp.f32 %v1063_v47 }
 0x3d4   : > { %v2303_v56 = vpop.eup %2302 }
 0x3d5   : > { %v1070_v59 = vmul.f32 %v2303_v56, %v2299_v40  ;;  %v1981_v40 = vld [vmem:[%s2859_s13] ss:$0 sm:$0xff] }
 0x3d6   : > { %v2305_v57 = vpop.eup %2304 }
 0x3d7   : > { %v1069_v58 = vmul.f32 %v2305_v57, %v2301_v42 }
 0x3d9   : > { %2180 = vmatprep.mubr.msk.f32.mxu0 %vm1048_vm4, %v1069_v58 }
 0x3da   : > { %2181 = vmatmul.mubr.msk.f32.vlgmr.msra.gmra.mxu0 %vm1048_vm4, %v1070_v59 }
 0x3db   : > { %2184 = vmatpush3.msra.mxu0 %v922_v44 }
 0x3dc   : > { %2185 = vmatprep.subr.mxu0 %v921_v60 }
 0x3dd   : > { %2186 = vmatpush3.msra.mxu0 %v921_v60 }
 0x3de   : > { %2187 = vmatprep.subr.mxu0 %v920_v61 }
 0x3df   : > { %2188 = vmatpush3.msra.mxu0 %v920_v61 }
 0x3e0   : > { %2189 = vmatprep.subr.mxu0 %v919_v62 }
 0x3e1   : > { %2190 = vmatpush3.msra.mxu0 %v919_v62 }
 0x3e2   : > { %2194 = vmatprep.subr.mxu0 %v932_v63 }
 0x49a   : > { %v2182_v0 = vpop.f32.mrf.mxu0 }
 0x49b   : > { %v2702_v3 = vadd.f32 %v2182_v0, %v2631_v55  ;;  %v929_v55 = vld [vmem:[%s2858_s12] sm:$0xff] }
 0x49c   : > { %v1143_v1 = vpop.f32.mrf.mxu0 }
 0x49d   : > { %v2699_v2 = vadd.f32 %v1143_v1, %v2560_v37  ;;  %v930_v37 = vld [vmem:[%s2858_s12 + $0x8] sm:$0xff] }
 0x49f   : > { %2191 = vmatprep.mubr.msk.f32.mxu0 %vm634_vm2, %v2699_v2  ;;  %2221 = vmatprep.mubr.msk.f32.mxu1 %vm634_vm2, %v2699_v2 }
 0x4a0   : > { %2192 = vmatmul.mubr.msk.f32.vlgmr.msra.gmra.mxu0 %vm634_vm2, %v2702_v3  ;;  %2222 = vmatmul.mubr.msk.f32.vlgmr.msra.gmra.mxu1 %vm634_vm2, %v2702_v3 }
 0x4a1   : > { %2195 = vmatpush3.msra.mxu0 %v932_v63 }
 0x4a2   : > { %2196 = vmatprep.subr.mxu0 %v931_v4 }
 0x4a3   : > { %2197 = vmatpush3.msra.mxu0 %v931_v4 }
 0x4a4   : > { %2198 = vmatprep.subr.mxu0 %v930_v37 }
 0x4a5   : > { %2199 = vmatpush3.msra.mxu0 %v930_v37 }
 0x4a6   : > { %2200 = vmatprep.subr.mxu0 %v929_v55 }
 0x4a7   : > { %2201 = vmatpush3.msra.mxu0 %v929_v55 }
 0x4a8   : > { %2224 = vmatprep.subr.mxu0 %v2567_v46 }
 0x560   : > { %v2193_v6 = vpop.f32.mrf.mxu0  ;;  %v2223_v7 = vpop.f32.mrf.mxu1 }
 0x561   : > { %v1438_v8 = vmul.f32 0.17677669, %v2223_v7  ;;  %v1238_v9 = vadd.f32 %v2193_v6, %v1978_v5 }
 0x562   : > { %v1232_v10 = vpop.f32.mrf.mxu0  ;;  %v1428_v11 = vpop.f32.mrf.mxu1 }
 0x563   : > { %v1233_v12 = vadd.f32 %v1978_v5, %v1232_v10  ;;  %v1437_v13 = vmul.f32 0.17677669, %v1428_v11  ;;  %v1440_v14 = vsub.f32 %v1438_v8, %v2671_v22  ;;  %v1242_v18 = vmax.f32 %v1238_v9, 0.0 }
 0x564   : > { %v1330_v22 = vmax.f32 %v2547_v29, 0.0 }
 0x565   : > { %v1241_v15 = vmax.f32 %v1233_v12, 0.0  ;;  %v1439_v16 = vsub.f32 %v1437_v13, %v2673_v25  ;;  %v1444_v17 = vsel %vm1048_vm4, %v1440_v14, -inf }
 0x566   : > { %1445 = vmax.xlane.f32.xlu0 %v1444_v17  ;;  %v1332_v23 = vmin.f32 %v1330_v22, 1.0 }
 0x567   : > { %2202 = vmatprep.mubr.msk.f32.mxu0 %vm634_vm2, %v1241_v15  ;;  %v1441_v19 = vsel %vm1048_vm4, %v1439_v16, -inf }
 0x568   : > { %1442 = vmax.xlane.f32.xlu1 %v1441_v19  ;;  %2203 = vmatmul.mubr.msk.f32.vlgmr.msra.gmra.mxu0 %vm634_vm2, %v1242_v18  ;;  %v1334_v32 = vmax.f32 %v1332_v23, 1e-05 }
 0x569   : > { %2225 = vmatpush3.msra.mxu0 %v2567_v46 }
 0x56a   : > { %2226 = vmatprep.subr.mxu0 %v2569_v48 }
 0x56b   : > { %2227 = vmatpush3.msra.mxu0 %v2569_v48 }
 0x56c   : > { %2228 = vmatprep.subr.mxu0 %v2577_v49 }
 0x56d   : > { %2229 = vmatpush3.msra.mxu0 %v2577_v49 }
 0x56e   : > { %2230 = vmatprep.subr.mxu0 %v2583_v50 }
 0x56f   : > { %2231 = vmatpush3.msra.mxu0 %v2583_v50 }
 0x570   : > { %2232 = vmatprep.subr.mxu0 %v2589_v51 }
 0x571   : > { %2233 = vmatpush3.msra.mxu0 %v2589_v51 }
 0x572   : > { %2234 = vmatprep.subr.mxu0 %v2595_v52 }
 0x573   : > { %2235 = vmatpush3.msra.mxu0 %v2595_v52  ;;  %v1333_v52 = vmin.f32 %v1331_v21, 1.0 }
 0x574   : > { %2236 = vmatprep.subr.mxu0 %v2601_v53 }
 0x575   : > { %2237 = vmatpush3.msra.mxu0 %v2601_v53  ;;  %v1337_v24 = vsub.f32 1.0, %v1333_v52  ;;  %v1336_v53 = vsub.f32 1.0, %v1332_v23  ;;  %v1335_v29 = vmax.f32 %v1333_v52, 1e-05  ;;  %v936_v23 = vld [vmem:[%s2858_s12 + $0x38] sm:$0xff] }
 0x576   : > { %2238 = vmatprep.subr.mxu0 %v2607_v54 }
 0x577   : > { %2239 = vmatpush3.msra.mxu0 %v2607_v54  ;;  %v1339_v25 = vmax.f32 %v1337_v24, 1e-05  ;;  %v1338_v54 = vmax.f32 %v1336_v53, 1e-05  ;;  %v935_v24 = vld [vmem:[%s2858_s12 + $0x30] sm:$0xff] }
 0x578   : > { %2243 = vmatprep.subr.mxu0 %v926_v36  ;;  %v1996_v53 = vld [vmem:[%s2857_s11 + $0x1] ss:$0 sm:$0xff] }
 0x5ef   : > { %v1446_v46 = vpop.xlane.xlu0 %1445 }
 0x5f0   : > { %v1448_v48 = vsub.f32 %v1440_v14, %v1446_v46 }
 0x5f1   : > { %v1443_v49 = vpop.xlane.xlu1 %1442 }
 0x5f2   : > { %v1451_v50 = vmul.f32 1.442695, %v1448_v48  ;;  %v1447_v20 = vsub.f32 %v1439_v16, %v1443_v49  ;;  %v925_v49 = vld [vmem:[%s2856_s10 + $0x30] sm:$0xff] }
 0x5f4   : > { %2306 = vpow2.f32 %v1451_v50  ;;  %v1449_v51 = vmul.f32 1.442695, %v1447_v20  ;;  %v924_v50 = vld [vmem:[%s2856_s10 + $0x28] sm:$0xff]  ;;  %v923_v20 = vld [vmem:[%s2856_s10 + $0x20] sm:$0xff] }
 0x5f6   : > { %2308 = vpow2.f32 %v1449_v51 }
 0x5f7   : > { %2310 = vrcp.f32 %v1339_v25 }
 0x5f8   : > { %2312 = vrcp.f32 %v1338_v54 }
 0x601   : > { %v2748_v26 = vpop.eup %2306 }
 0x602   : > { %v1456_v27 = vsel %vm1048_vm4, %v2748_v26, 0.0 }
 0x603   : > { %v2752_v28 = vpop.eup %2308  ;;  %1457 = vadd.xlane.f32.xlu0 %v1456_v27 }
 0x604   : > { %v1453_v30 = vsel %vm1048_vm4, %v2752_v28, 0.0  ;;  %v2311_v31 = vpop.eup %2310 }
 0x605   : > { %1454 = vadd.xlane.f32.xlu1 %v1453_v30  ;;  %v2313_v33 = vpop.eup %2312  ;;  %v1343_v34 = vmul.f32 %v2311_v31, %v1335_v29 }
 0x606   : > { %v1341_v35 = vmul.f32 %v2313_v33, %v1334_v32 }
 0x607   : > { %2314 = vlog2.f32 %v1343_v34 }
 0x608   : > { %2316 = vlog2.f32 %v1341_v35 }
 0x614   : > { %v2315_v38 = vpop.eup %2314 }
 0x615   : > { %v2317_v39 = vpop.eup %2316  ;;  %v1347_v41 = vmul.f32 0.6931472, %v2315_v38 }
 0x616   : > { %v1345_v44 = vmul.f32 0.6931472, %v2317_v39 }
 0x628   : > { %v2204_v42 = vpop.f32.mrf.mxu0 }
 0x629   : > { %v1327_v43 = vadd.f32 %v2204_v42, %v1981_v40 }
 0x62a   : > { %v1321_v45 = vpop.f32.mrf.mxu0 }
 0x62b   : > { %v1349_v47 = vadd.f32 %v1347_v41, %v1327_v43  ;;  %v1322_v56 = vadd.f32 %v1981_v40, %v1321_v45 }
 0x62d   : > { %v1351_v57 = vsub.f32 0.0, %v1349_v47  ;;  %v1348_v58 = vadd.f32 %v1345_v44, %v1322_v56  ;;  %v1999_v47 = vld [vmem:[%s2859_s13 + $0x1] ss:$0 sm:$0xff] }
 0x62f   : > { %v1354_v59 = vmul.f32 1.442695, %v1351_v57  ;;  %v1350_v60 = vsub.f32 0.0, %v1348_v58 }
 0x631   : > { %2318 = vpow2.f32 %v1354_v59  ;;  %v1352_v61 = vmul.f32 1.442695, %v1350_v60 }
 0x633   : > { %2320 = vpow2.f32 %v1352_v61 }
 0x63e   : > { %v2319_v62 = vpop.eup %2318 }
 0x63f   : > { %v1357_v63 = vadd.f32 1.0, %v2319_v62 }
 0x640   : > { %v2321_v0 = vpop.eup %2320 }
 0x641   : > { %2322 = vrcp.f32 %v1357_v63  ;;  %v1356_v1 = vadd.f32 1.0, %v2321_v0 }
 0x643   : > { %2324 = vrcp.f32 %v1356_v1 }
 0x64e   : > { %v2762_v4 = vpop.eup %2322 }
 0x64f   : > { %vm1755_vm5 = vcmp.ne.f32.partialorder %v2762_v4, %v2762_v4  ;;  %v1723_v29 = vmax.f32 %v2762_v4, 0.0 }
 0x650   : > { %v2767_v37 = vpop.eup %2324  ;;  %v1759_v55 = vsel %vm1755_vm5, 0.0, %v2762_v4 }
 0x651   : > { %v2003_v5 = vclamps-f32 %v1759_v55, 3.4028235e+38  ;;  %vm1754_vm6 = vcmp.ne.f32.partialorder %v2767_v37, %v2767_v37  ;;  %v1722_v31 = vmax.f32 %v2767_v37, 0.0  ;;  %v1725_v32 = vmin.f32 %v1723_v29, 1.0 }
 0x652   : > { %v1758_v6 = vsel %vm1754_vm6, 0.0, %v2767_v37 }
 0x653   : > { %v2002_v7 = vclamps-f32 %v1758_v6, 3.4028235e+38  ;;  %v1771_v8 = vmul.f32 2.0, %v2003_v5  ;;  %v1779_v11 = vmul.f32 1.5, %v2003_v5  ;;  %v1724_v33 = vmin.f32 %v1722_v31, 1.0 }
 0x654   : > { %v1729_v34 = vsub.f32 1.0, %v1725_v32  ;;  %v1727_v40 = vmax.f32 %v1725_v32, 1e-05 }
 0x655   : > { %v1770_v9 = vmul.f32 2.0, %v2002_v7  ;;  %v1775_v10 = vadd.f32 -1.0, %v1771_v8  ;;  %v1778_v13 = vmul.f32 1.5, %v2002_v7  ;;  %v1728_v35 = vsub.f32 1.0, %v1724_v33 }
 0x656   : > { %v1726_v43 = vmax.f32 %v1724_v33, 1e-05 }
 0x657   : > { %v1774_v12 = vadd.f32 -1.0, %v1770_v9  ;;  %v1788_v14 = vsel %vm1786_vm7, %v1775_v10, %v1779_v11  ;;  %v1730_v38 = vmax.f32 %v1728_v35, 1e-05 }
 0x658   : > { %1793 = vst.msk [vmem:[%s2774_s29 + $0x8] sm:$0xff] %vm1791_vm8, %v1788_v14 }
 0x659   : > { %v1787_v15 = vsel %vm1786_vm7, %v1774_v12, %v1778_v13 }
 0x65a   : > { %1792 = vst.msk [vmem:[%s2774_s29] sm:$0xff] %vm1791_vm8, %v1787_v15 }
 0x68c   : > { %v1458_v16 = vpop.xlane.xlu0 %1457 }
 0x68d   : > { %2326 = vrcp.f32 %v1458_v16 }
 0x68e   : > { %v1455_v17 = vpop.xlane.xlu1 %1454 }
 0x68f   : > { %2328 = vrcp.f32 %v1455_v17 }
 0x69a   : > { %v2327_v18 = vpop.eup %2326 }
 0x69b   : > { %v1462_v48 = vmul.f32 %v2327_v18, %v2748_v26 }
 0x69c   : > { %v2329_v19 = vpop.eup %2328 }
 0x69d   : > { %v1461_v46 = vmul.f32 %v2329_v19, %v2752_v28 }
 0x69f   : > { %2240 = vmatprep.mubr.msk.f32.mxu0 %vm1048_vm4, %v1461_v46 }
 0x6a0   : > { %2241 = vmatmul.mubr.msk.f32.vlgmr.msra.gmra.mxu0 %vm1048_vm4, %v1462_v48 }
 0x6a1   : > { %2244 = vmatpush3.msra.mxu0 %v926_v36  ;;  %v1731_v36 = vmax.f32 %v1729_v34, 1e-05 }
 0x6a2   : > { %2245 = vmatprep.subr.mxu0 %v925_v49 }
 0x6a3   : > { %2246 = vmatpush3.msra.mxu0 %v925_v49  ;;  %2330 = vrcp.f32 %v1731_v36 }
 0x6a4   : > { %2247 = vmatprep.subr.mxu0 %v924_v50  ;;  %2332 = vrcp.f32 %v1730_v38 }
 0x6a5   : > { %2248 = vmatpush3.msra.mxu0 %v924_v50  ;;  %v1840_v50 = vld [vmem:[%s2774_s29] sm:$0xff] (%p2473_p4) }
 0x6a6   : > { %2249 = vmatprep.subr.mxu0 %v923_v20  ;;  %1841 = vst [vmem:[%s1805_s26] sm:$0xff] (%p2473_p4), %v1840_v50 }
 0x6a7   : > { %2250 = vmatpush3.msra.mxu0 %v923_v20  ;;  %v1842_v20 = vld [vmem:[%s2774_s29 + $0x8] sm:$0xff] (%p2473_p4) }
 0x6a8   : > { %2254 = vmatprep.subr.mxu0 %v936_v23  ;;  %1843 = vst [vmem:[%s1805_s26 + $0x8] sm:$0xff] (%p2473_p4), %v1842_v20 }
 0x6b0   : > { %v2331_v39 = vpop.eup %2330 }
 0x6b1   : > { %v2333_v41 = vpop.eup %2332  ;;  %v1735_v42 = vmul.f32 %v2331_v39, %v1727_v40 }
 0x6b2   : > { %v1733_v44 = vmul.f32 %v2333_v41, %v1726_v43 }
 0x6b3   : > { %2334 = vlog2.f32 %v1735_v42 }
 0x6b4   : > { %2336 = vlog2.f32 %v1733_v44 }
 0x6c0   : > { %v2335_v45 = vpop.eup %2334 }
 0x6c1   : > { %v2337_v56 = vpop.eup %2336  ;;  %v1739_v59 = vmul.f32 0.6931472, %v2335_v45 }
 0x6c2   : > { %v1737_v63 = vmul.f32 0.6931472, %v2337_v56 }
 0x760   : > { %v2242_v21 = vpop.f32.mrf.mxu0 }
 0x761   : > { %v1545_v52 = vadd.f32 %v2242_v21, %v2702_v3  ;;  %v933_v3 = vld [vmem:[%s2858_s12 + $0x20] sm:$0xff] }
 0x762   : > { %v1535_v51 = vpop.f32.mrf.mxu0 }
 0x763   : > { %v1544_v22 = vadd.f32 %v1535_v51, %v2699_v2  ;;  %v934_v2 = vld [vmem:[%s2858_s12 + $0x28] sm:$0xff] }
 0x765   : > { %2251 = vmatprep.mubr.msk.f32.mxu0 %vm634_vm2, %v1544_v22 }
 0x766   : > { %2252 = vmatmul.mubr.msk.f32.vlgmr.msra.gmra.mxu0 %vm634_vm2, %v1545_v52 }
 0x767   : > { %2255 = vmatpush3.msra.mxu0 %v936_v23 }
 0x768   : > { %2256 = vmatprep.subr.mxu0 %v935_v24 }
 0x769   : > { %2257 = vmatpush3.msra.mxu0 %v935_v24 }
 0x76a   : > { %2258 = vmatprep.subr.mxu0 %v934_v2 }
 0x76b   : > { %2259 = vmatpush3.msra.mxu0 %v934_v2 }
 0x76c   : > { %2260 = vmatprep.subr.mxu0 %v933_v3 }
 0x76d   : > { %2261 = vmatpush3.msra.mxu0 %v933_v3 }
 0x826   : > { %v2253_v25 = vpop.f32.mrf.mxu0 }
 0x827   : > { %v1630_v26 = vadd.f32 %v2253_v25, %v1996_v53 }
 0x828   : > { %v1624_v54 = vpop.f32.mrf.mxu0 }
 0x829   : > { %v1625_v27 = vadd.f32 %v1996_v53, %v1624_v54  ;;  %v1634_v30 = vmax.f32 %v1630_v26, 0.0 }
 0x82b   : > { %v1633_v28 = vmax.f32 %v1625_v27, 0.0 }
 0x82d   : > { %2262 = vmatprep.mubr.msk.f32.mxu0 %vm634_vm2, %v1633_v28 }
 0x82e   : > { %2263 = vmatmul.mubr.msk.f32.vlgmr.msra.gmra.mxu0 %vm634_vm2, %v1634_v30 }
 0x8ee   : > { %v2264_v57 = vpop.f32.mrf.mxu0 }
 0x8ef   : > { %v1719_v58 = vadd.f32 %v2264_v57, %v1999_v47 }
 0x8f0   : > { %v1713_v60 = vpop.f32.mrf.mxu0 }
 0x8f1   : > { %v1741_v61 = vadd.f32 %v1739_v59, %v1719_v58  ;;  %v1714_v62 = vadd.f32 %v1999_v47, %v1713_v60 }
 0x8f3   : > { %v1743_v0 = vsub.f32 0.0, %v1741_v61  ;;  %v1740_v1 = vadd.f32 %v1737_v63, %v1714_v62 }
 0x8f5   : > { %v1746_v4 = vmul.f32 1.442695, %v1743_v0  ;;  %v1742_v37 = vsub.f32 0.0, %v1740_v1 }
 0x8f7   : > { %2338 = vpow2.f32 %v1746_v4  ;;  %v1744_v55 = vmul.f32 1.442695, %v1742_v37 }
 0x8f9   : > { %2340 = vpow2.f32 %v1744_v55 }
 0x904   : > { %v2339_v5 = vpop.eup %2338 }
 0x905   : > { %v1749_v6 = vadd.f32 1.0, %v2339_v5 }
 0x906   : > { %v2341_v7 = vpop.eup %2340 }
 0x907   : > { %2342 = vrcp.f32 %v1749_v6  ;;  %v1748_v8 = vadd.f32 1.0, %v2341_v7 }
 0x909   : > { %2344 = vrcp.f32 %v1748_v8 }
 0x914   : > { %v2343_v9 = vpop.eup %2342 }
 0x915   : > { %vm1757_vm9 = vcmp.ne.f32.partialorder %v2343_v9, %v2343_v9 }
 0x916   : > { %v2345_v10 = vpop.eup %2344  ;;  %v1761_v11 = vsel %vm1757_vm9, 0.0, %v2343_v9 }
 0x917   : > { %v2005_v12 = vclamps-f32 %v1761_v11, 3.4028235e+38  ;;  %vm1756_vm10 = vcmp.ne.f32.partialorder %v2345_v10, %v2345_v10 }
 0x918   : > { %v1760_v13 = vsel %vm1756_vm10, 0.0, %v2345_v10 }
 0x919   : > { %v1773_v14 = vmul.f32 2.0, %v2005_v12  ;;  %v2004_v15 = vclamps-f32 %v1760_v13, 3.4028235e+38  ;;  %v1781_v17 = vmul.f32 1.5, %v2005_v12 }
 0x91b   : > { %v1777_v16 = vadd.f32 -1.0, %v1773_v14  ;;  %v1772_v18 = vmul.f32 2.0, %v2004_v15  ;;  %v1780_v48 = vmul.f32 1.5, %v2004_v15 }
 0x91c   : > { %1802 = sbr.rel (!%p2473_p4) target bundleno = 2345 (0x929), region = 80 }
 0x91d   : > { %v1790_v19 = vsel %vm1786_vm7, %v1777_v16, %v1781_v17  ;;  %v1776_v46 = vadd.f32 -1.0, %v1772_v18 }
 0x91e   : > { %1795 = vst.msk [vmem:[%s2774_s29 + $0x18] sm:$0xff] %vm1791_vm8, %v1790_v19 }
 0x91f   : > { %v1789_v49 = vsel %vm1786_vm7, %v1776_v46, %v1780_v48 }
 0x920   : > { %1794 = vst.msk [vmem:[%s2774_s29 + $0x10] sm:$0xff] %vm1791_vm8, %v1789_v49 }
 0x925   : > { %v1846_v51 = vld [vmem:[%s2774_s29 + $0x18] sm:$0xff] }
 0x926   : > { %1847 = vst [vmem:[%s1805_s26 + $0x28] sm:$0xff] %v1846_v51 }
 0x927   : > { %v1844_v21 = vld [vmem:[%s2774_s29 + $0x10] sm:$0xff] }
 0x928   : > { %1845 = vst [vmem:[%s1805_s26 + $0x20] sm:$0xff] %v1844_v21 }
 0x929 PF: > { %s2863_s21 = sld [smem:[#allocation3_spill]]  ;;  %p21_p8 = scmp.ge.s32.totalorder %s2463_s17, 4  }
 0x92a   : > { %s2864_s29 = smov %s2364_s30  ;;  %s2866_s15 = smov %s2463_s17 }
 0x92b   :  { %23 = sbr.rel (!%p21_p8) target bundleno = 2 (0x2), region = 153 }
 0x92f   : > { %s2865_s30 = smov %s2863_s21 }

</bundles_post_ra>
